<compile_context>
chip_gen: v5e
topology: v5e:2x2
jax: 0.10.0
libtpu: 0.0.40
codegen_flags: <defaults>
</compile_context>

<pallas_src>
import math

import jax
import jax.numpy as jnp
from jax import lax
from jax.experimental import pallas as pl
from jax.experimental.pallas import tpu as pltpu


def _round_up(x, m):
    return ((x + m - 1) // m) * m


def _num_tensorcores():
    """Best-effort TensorCore count per device (1 on v5e/v6e, 2 on v4/v5p
    megacore and v7x).  Conservative default is 1 (never over-split)."""
    try:
        info = pltpu.get_tpu_info()
        for attr in ("num_cores", "core_count", "num_tensorcores",
                     "tensor_core_count", "cores_per_chip"):
            n = getattr(info, attr, None)
            if isinstance(n, int) and n > 0:
                return n
    except Exception:
        pass
    try:
        kind = jax.devices()[0].device_kind.lower()
        if ("v4" in kind) or ("v5p" in kind) or ("v5 p" in kind) or ("7" in kind):
            return 2
    except Exception:
        pass
    return 1


def _make_layer_kernel(seq_len, seq_pad, t_blk, compute_dtype, unroll):
    """One RNN layer.

    phase 1: input projection for the whole time block as ONE MXU GEMM
             (t_blk*b_blk, in) @ (in, H), bias fused, stashed in the (f32)
             output block.
    phase 2: sequential scan; h is carried in vregs, only the (b,H)@(H,H)
             recurrence, the proj load, tanh and the y store sit on the
             serial critical path.  The resident h output block (constant
             index along the 'arbitrary' time axis) is read once / written
             once per block.
    """
    masked = seq_pad != seq_len

    def kernel(x_ref, w_ih_ref, w_hh_ref, b_ref, y_ref, h_ref):
        t_idx = pl.program_id(1)

        @pl.when(t_idx == 0)
        def _():
            # hx=None semantics: zero initial hidden state (per batch block).
            h_ref[...] = jnp.zeros_like(h_ref)

        tb, bb, in_p = x_ref.shape
        h_p = h_ref.shape[-1]

        # ---- phase 1: one big GEMM for the block's input projection --------
        x2d = x_ref[...].astype(compute_dtype).reshape(tb * bb, in_p)
        proj = jnp.dot(x2d, w_ih_ref[...], preferred_element_type=jnp.float32)
        proj = proj.reshape(tb, bb, h_p) + b_ref[...]       # fused bias (f32)
        y_ref[...] = proj.astype(y_ref.dtype)               # stash in output

        # ---- phase 2: sequential recurrence, h carried in vregs ------------
        w_hh = w_hh_ref[...]
        t0 = t_idx * t_blk

        def make_step(apply_mask):
            def step(i, h):
                pre = y_ref[i].astype(jnp.float32) + jnp.dot(
                    h.astype(compute_dtype), w_hh,
                    preferred_element_type=jnp.float32)
                h_new = jnp.tanh(pre)
                if apply_mask:
                    # keep the carried state exact past zero-padded timesteps
                    h_new = jnp.where(t0 + i < seq_len, h_new, h)
                y_ref[i] = h_new.astype(y_ref.dtype)
                return h_new
            return step

        def scan_block(apply_mask):
            step = make_step(apply_mask)
            h = h_ref[...]                                   # read once / block
            if t_blk <= 8:
                for i in range(t_blk):                       # static unroll
                    h = step(i, h)
            else:
                h = lax.fori_loop(0, t_blk, step, h, unroll=unroll)
            h_ref[...] = h                                   # write once / block

        if not masked:
            scan_block(False)
        else:
            last = pl.num_programs(1) - 1

            @pl.when(t_idx != last)
            def _():
                scan_block(False)                            # hot path: no mask

            @pl.when(t_idx == last)
            def _():
                scan_block(True)                             # only padded block

    return kernel


def rnn_forward_pallas(x, weight_ih, weight_hh, bias_ih, bias_hh,
                       *, t_blk=32, compute_dtype=jnp.bfloat16):
    """x: (seq_len, batch, input_size), time-major (batch_first=False).
    weight_ih[l]: (hidden, in_l), weight_hh[l]: (hidden, hidden) — PyTorch
    layout; transposed / padded / bias-fused here.  Returns
    (output (seq, batch, hidden), hx (num_layers, batch, hidden))."""
    seq_len, batch, input_size = x.shape
    num_layers = len(weight_ih)
    hidden_size = weight_hh[0].shape[0]
    dtype = x.dtype

    # lane/sublane-dense padding
    h_p = _round_up(hidden_size, 128)
    batch_p = _round_up(batch, 8)
    t_blk = max(1, min(t_blk, seq_len))
    seq_pad = _round_up(seq_len, t_blk)
    unroll = min(8, t_blk)

    # Split the batch across cores only when there is more than one TensorCore
    # and each core still gets a >=16-row batch block (v7x megacore); on 1-TC
    # v5e/v6e splitting would just serialize two full time scans.
    num_tc = _num_tensorcores()
    if num_tc >= 2 and batch_p % 16 == 0 and batch_p // 2 >= 16:
        b_blk = batch_p // 2
    else:
        b_blk = batch_p
    grid = (batch_p // b_blk, seq_pad // t_blk)

    in_p0 = _round_up(input_size, 128)
    x_l = jnp.zeros((seq_pad, batch_p, in_p0), dtype)
    x_l = x_l.at[:seq_len, :batch, :input_size].set(x)

    act_bytes = jnp.dtype(dtype).itemsize
    w_bytes = jnp.dtype(compute_dtype).itemsize

    h_finals = []
    for layer in range(num_layers):
        in_l = input_size if layer == 0 else hidden_size
        in_lp = x_l.shape[-1]

        # pre-transpose, zero-pad, cast to compute dtype, fuse biases (f32)
        w_ih_t = jnp.zeros((in_lp, h_p), compute_dtype)
        w_ih_t = w_ih_t.at[:in_l, :hidden_size].set(
            weight_ih[layer].T.astype(compute_dtype))
        w_hh_t = jnp.zeros((h_p, h_p), compute_dtype)
        w_hh_t = w_hh_t.at[:hidden_size, :hidden_size].set(
            weight_hh[layer].T.astype(compute_dtype))
        bias = jnp.zeros((1, h_p), jnp.float32)
        bias = bias.at[0, :hidden_size].set(
            (bias_ih[layer] + bias_hh[layer]).astype(jnp.float32))

        kernel = _make_layer_kernel(seq_len, seq_pad, t_blk, compute_dtype,
                                    unroll)

        flops = 2 * seq_pad * batch_p * (in_lp + h_p) * h_p
        bytes_accessed = (act_bytes * (x_l.size + seq_pad * batch_p * h_p)
                          + w_bytes * (w_ih_t.size + w_hh_t.size)
                          + 4 * (batch_p * h_p + h_p))
        cost = pl.CostEstimate(flops=flops,
                               transcendentals=seq_pad * batch_p * h_p,
                               bytes_accessed=bytes_accessed)

        def run_layer(single_buffer_weights):
            def w_spec(shape):
                if single_buffer_weights and hasattr(pl, "Buffered"):
                    # resident weights: constant index map, no double buffering
                    return pl.BlockSpec(shape, lambda bi, ti: (0, 0),
                                        pipeline_mode=pl.Buffered(1))
                return pl.BlockSpec(shape, lambda bi, ti: (0, 0))

            # VMEM budget from actual block sizes (+ headroom), not hard-coded.
            weight_mult = 1 if single_buffer_weights else 2
            need = (2 * t_blk * b_blk * (in_lp + h_p) * act_bytes      # x/y dbl-buf
                    + weight_mult * (in_lp * h_p + h_p * h_p) * w_bytes
                    + 2 * b_blk * h_p * 4 + 2 * h_p * 4)
            vmem_limit = int(min(100 * 2**20,
                                 max(32 * 2**20, 2 * need + 8 * 2**20)))

            return pl.pallas_call(
                kernel,
                grid_spec=pltpu.PrefetchScalarGridSpec(
                    num_scalar_prefetch=0,
                    grid=grid,
                    in_specs=[
                        pl.BlockSpec((t_blk, b_blk, in_lp),
                                     lambda bi, ti: (ti, bi, 0)),
                        w_spec((in_lp, h_p)),
                        w_spec((h_p, h_p)),
                        w_spec((1, h_p)),
                    ],
                    out_specs=(
                        pl.BlockSpec((t_blk, b_blk, h_p),
                                     lambda bi, ti: (ti, bi, 0)),
                        pl.BlockSpec((b_blk, h_p), lambda bi, ti: (bi, 0)),
                    ),
                ),
                out_shape=(
                    jax.ShapeDtypeStruct((seq_pad, batch_p, h_p), dtype),
                    jax.ShapeDtypeStruct((batch_p, h_p), jnp.float32),
                ),
                compiler_params=pltpu.CompilerParams(
                    dimension_semantics=("parallel", "arbitrary"),
                    vmem_limit_bytes=vmem_limit,
                ),
                cost_estimate=cost,
            )(x_l, w_ih_t, w_hh_t, bias)

        try:
            y, h_fin = run_layer(True)
        except Exception:
            # Older jax without pipeline_mode / Buffered(1) input support.
            y, h_fin = run_layer(False)

        h_finals.append(h_fin)
        x_l = y   # next layer consumes this layer's full (padded) output

    output = x_l[:seq_len, :batch, :hidden_size]
    hx = jnp.stack(h_finals, axis=0)[:, :batch, :hidden_size].astype(dtype)
    return output, hx


def rnn_forward_ref(x, weight_ih, weight_hh, bias_ih, bias_hh):
    """Pure-JAX reference mirroring the PyTorch forward (bias=True path)."""
    seq_len, batch, _ = x.shape
    num_layers = len(weight_ih)
    hidden_size = weight_hh[0].shape[0]
    hx = [jnp.zeros((batch, hidden_size), x.dtype) for _ in range(num_layers)]
    outs = []
    for t in range(seq_len):
        xt = x[t]
        for layer in range(num_layers):
            h = (xt @ weight_ih[layer].T + bias_ih[layer]
                 + hx[layer] @ weight_hh[layer].T + bias_hh[layer])
            h = jnp.tanh(h)
            xt = h
            hx[layer] = h
        outs.append(xt)
    return jnp.stack(outs, axis=0), jnp.stack(hx, axis=0)


def init_params(key, input_size, hidden_size, num_layers):
    """Deterministic synthetic init (kaiming-uniform-ish ih, orthogonal hh,
    zero biases), matching the shapes in the PyTorch module."""
    weight_ih, weight_hh, bias_ih, bias_hh = [], [], [], []
    for layer in range(num_layers):
        in_feats = input_size if layer == 0 else hidden_size
        key, k1, k2 = jax.random.split(key, 3)
        bound = 1.0 / math.sqrt(in_feats)
        weight_ih.append(
            jax.random.uniform(k1, (hidden_size, in_feats),
                               minval=-bound, maxval=bound, dtype=jnp.float32))
        a = jax.random.normal(k2, (hidden_size, hidden_size), dtype=jnp.float32)
        q, _ = jnp.linalg.qr(a)
        weight_hh.append(q.astype(jnp.float32))
        bias_ih.append(jnp.zeros((hidden_size,), jnp.float32))
        bias_hh.append(jnp.zeros((hidden_size,), jnp.float32))
    return weight_ih, weight_hh, bias_ih, bias_hh


if __name__ == "__main__":
    seq_len, batch, input_size, hidden_size, num_layers = 8, 8, 16, 32, 2

    key = jax.random.PRNGKey(0)
    key, kx = jax.random.split(key)
    x = jax.random.normal(kx, (seq_len, batch, input_size), dtype=jnp.float32)

    weight_ih, weight_hh, bias_ih, bias_hh = init_params(
        key, input_size, hidden_size, num_layers)

    out_ref, hx_ref = rnn_forward_ref(x, weight_ih, weight_hh, bias_ih, bias_hh)

    # 1) f32 compute path: tight check against the f32 reference.
    out32, hx32 = rnn_forward_pallas(x, weight_ih, weight_hh, bias_ih, bias_hh,
                                     compute_dtype=jnp.float32)
    out32 = jax.block_until_ready(out32)
    hx32 = jax.block_until_ready(hx32)
    assert out32.shape == (seq_len, batch, hidden_size)
    assert hx32.shape == (num_layers, batch, hidden_size)
    assert jnp.allclose(out32, out_ref, atol=1e-4, rtol=1e-4)
    assert jnp.allclose(hx32, hx_ref, atol=1e-4, rtol=1e-4)

    # 2) performance default (bf16 MXU matmuls, f32 accumulation / carry):
    #    bf16-aware looser tolerance.
    out, hx = rnn_forward_pallas(x, weight_ih, weight_hh, bias_ih, bias_hh)
    out = jax.block_until_ready(out)
    hx = jax.block_until_ready(hx)
    assert out.shape == (seq_len, batch, hidden_size)
    assert hx.shape == (num_layers, batch, hidden_size)
    assert float(jnp.max(jnp.abs(out - out_ref))) < 1e-1
    assert float(jnp.max(jnp.abs(hx - hx_ref))) < 1e-1

    print("KERNEL_OK")
</pallas_src>

<mosaic_0001>
module attributes {stable_mosaic.version = 11 : i64} {
  func.func @kernel(%arg0: i32, %arg1: i32, %arg2: memref<8x8x128xf32, #tpu.memory_space<vmem>>, %arg3: memref<128x128xf32, #tpu.memory_space<vmem>>, %arg4: memref<128x128xf32, #tpu.memory_space<vmem>>, %arg5: memref<1x128xf32, #tpu.memory_space<vmem>>, %arg6: memref<8x8x128xf32, #tpu.memory_space<vmem>>, %arg7: memref<8x128xf32, #tpu.memory_space<vmem>>) attributes {dimension_semantics = [#tpu.dimension_semantics<parallel>, #tpu.dimension_semantics<arbitrary>], iteration_bounds = array<i64: 1, 1>, scalar_prefetch = 0 : i64, scratch_operands = 0 : i64, tpu.core_type = #tpu.core_type<tc>, window_params = [{transform_indices = @transform_0, window_bounds = array<i64: 8, 8, 128>}, {pipeline_mode = #tpu.pipeline_mode<synchronous>, transform_indices = @transform_1, window_bounds = array<i64: 128, 128>}, {pipeline_mode = #tpu.pipeline_mode<synchronous>, transform_indices = @transform_2, window_bounds = array<i64: 128, 128>}, {pipeline_mode = #tpu.pipeline_mode<synchronous>, transform_indices = @transform_3, window_bounds = array<i64: 1, 128>}, {transform_indices = @transform_4, window_bounds = array<i64: 8, 8, 128>}, {transform_indices = @transform_5, window_bounds = array<i64: 8, 128>}]} {
    %c0_i32 = arith.constant 0 : i32
    %0 = arith.cmpi eq, %arg1, %c0_i32 : i32
    %1 = arith.extui %0 : i1 to i32
    %c0_i32_0 = arith.constant 0 : i32
    %2 = arith.cmpi ne, %1, %c0_i32_0 : i32
    scf.if %2 {
      %cst_65 = arith.constant 0.000000e+00 : f32
      %80 = vector.broadcast %cst_65 : f32 to vector<8x128xf32>
      %c0_66 = arith.constant 0 : index
      %c0_67 = arith.constant 0 : index
      %81 = vector.load %arg7[%c0_66, %c0_67] : memref<8x128xf32, #tpu.memory_space<vmem>>, vector<8x128xf32>
      tpu.vector_store %arg7[%c0_66, %c0_67], %80 {strides = array<i32>} : memref<8x128xf32, #tpu.memory_space<vmem>>, vector<8x128xf32>,
    } else {
    }
    %c0 = arith.constant 0 : index
    %c0_1 = arith.constant 0 : index
    %c0_2 = arith.constant 0 : index
    %3 = vector.load %arg2[%c0, %c0_1, %c0_2] : memref<8x8x128xf32, #tpu.memory_space<vmem>>, vector<8x8x128xf32>
    %4 = vector.shape_cast %3 : vector<8x8x128xf32> to vector<64x128xf32>
    %c0_3 = arith.constant 0 : index
    %c0_4 = arith.constant 0 : index
    %5 = vector.load %arg3[%c0_3, %c0_4] : memref<128x128xf32, #tpu.memory_space<vmem>>, vector<128x128xf32>
    %cst = arith.constant dense<0.000000e+00> : vector<64x128xf32>
    %6 = tpu.matmul %4, %5, %cst {dimension_numbers = #tpu.dot_dimension_numbers<[1], [0], [0], [1], [0, 0, 1, 1], [], []>} : vector<64x128xf32>, vector<128x128xf32>, vector<64x128xf32> -> vector<64x128xf32>
    %7 = vector.shape_cast %6 : vector<64x128xf32> to vector<8x8x128xf32>
    %c0_5 = arith.constant 0 : index
    %c0_6 = arith.constant 0 : index
    %8 = vector.load %arg5[%c0_5, %c0_6] : memref<1x128xf32, #tpu.memory_space<vmem>>, vector<1x128xf32>
    %9 = vector.shape_cast %8 : vector<1x128xf32> to vector<1x1x128xf32>
    %10 = vector.broadcast %9 : vector<1x1x128xf32> to vector<8x8x128xf32>
    %11 = arith.addf %7, %10 : vector<8x8x128xf32>
    %c0_7 = arith.constant 0 : index
    %c0_8 = arith.constant 0 : index
    %c0_9 = arith.constant 0 : index
    %12 = vector.load %arg6[%c0_7, %c0_8, %c0_9] : memref<8x8x128xf32, #tpu.memory_space<vmem>>, vector<8x8x128xf32>
    tpu.vector_store %arg6[%c0_7, %c0_8, %c0_9], %11 {strides = array<i32>} : memref<8x8x128xf32, #tpu.memory_space<vmem>>, vector<8x8x128xf32>,
    %c0_10 = arith.constant 0 : index
    %c0_11 = arith.constant 0 : index
    %13 = vector.load %arg4[%c0_10, %c0_11] : memref<128x128xf32, #tpu.memory_space<vmem>>, vector<128x128xf32>
    %c0_12 = arith.constant 0 : index
    %c0_13 = arith.constant 0 : index
    %14 = vector.load %arg7[%c0_12, %c0_13] : memref<8x128xf32, #tpu.memory_space<vmem>>, vector<8x128xf32>
    %c0_14 = arith.constant 0 : index
    %c0_15 = arith.constant 0 : index
    %c0_16 = arith.constant 0 : index
    %15 = vector.load %arg6[%c0_14, %c0_15, %c0_16] : memref<8x8x128xf32, #tpu.memory_space<vmem>>, vector<1x8x128xf32>
    %16 = vector.shape_cast %15 : vector<1x8x128xf32> to vector<8x128xf32>
    %cst_17 = arith.constant dense<0.000000e+00> : vector<8x128xf32>
    %17 = tpu.matmul %14, %13, %cst_17 {dimension_numbers = #tpu.dot_dimension_numbers<[1], [0], [0], [1], [0, 0, 1, 1], [], []>} : vector<8x128xf32>, vector<128x128xf32>, vector<8x128xf32> -> vector<8x128xf32>
    %18 = arith.addf %16, %17 : vector<8x128xf32>
    %19 = math.tanh %18 : vector<8x128xf32>
    %c0_18 = arith.constant 0 : index
    %c0_19 = arith.constant 0 : index
    %c0_20 = arith.constant 0 : index
    %20 = vector.load %arg6[%c0_18, %c0_19, %c0_20] : memref<8x8x128xf32, #tpu.memory_space<vmem>>, vector<1x8x128xf32>
    %21 = vector.shape_cast %20 : vector<1x8x128xf32> to vector<8x128xf32>
    %22 = vector.shape_cast %19 : vector<8x128xf32> to vector<1x8x128xf32>
    tpu.vector_store %arg6[%c0_18, %c0_19, %c0_20], %22 {strides = array<i32>} : memref<8x8x128xf32, #tpu.memory_space<vmem>>, vector<1x8x128xf32>,
    %c1 = arith.constant 1 : index
    %c0_21 = arith.constant 0 : index
    %c0_22 = arith.constant 0 : index
    %23 = vector.load %arg6[%c1, %c0_21, %c0_22] : memref<8x8x128xf32, #tpu.memory_space<vmem>>, vector<1x8x128xf32>
    %24 = vector.shape_cast %23 : vector<1x8x128xf32> to vector<8x128xf32>
    %cst_23 = arith.constant dense<0.000000e+00> : vector<8x128xf32>
    %25 = tpu.matmul %19, %13, %cst_23 {dimension_numbers = #tpu.dot_dimension_numbers<[1], [0], [0], [1], [0, 0, 1, 1], [], []>} : vector<8x128xf32>, vector<128x128xf32>, vector<8x128xf32> -> vector<8x128xf32>
    %26 = arith.addf %24, %25 : vector<8x128xf32>
    %27 = math.tanh %26 : vector<8x128xf32>
    %c1_24 = arith.constant 1 : index
    %c0_25 = arith.constant 0 : index
    %c0_26 = arith.constant 0 : index
    %28 = vector.load %arg6[%c1_24, %c0_25, %c0_26] : memref<8x8x128xf32, #tpu.memory_space<vmem>>, vector<1x8x128xf32>
    %29 = vector.shape_cast %28 : vector<1x8x128xf32> to vector<8x128xf32>
    %30 = vector.shape_cast %27 : vector<8x128xf32> to vector<1x8x128xf32>
    tpu.vector_store %arg6[%c1_24, %c0_25, %c0_26], %30 {strides = array<i32>} : memref<8x8x128xf32, #tpu.memory_space<vmem>>, vector<1x8x128xf32>,
    %c2 = arith.constant 2 : index
    %c0_27 = arith.constant 0 : index
    %c0_28 = arith.constant 0 : index
    %31 = vector.load %arg6[%c2, %c0_27, %c0_28] : memref<8x8x128xf32, #tpu.memory_space<vmem>>, vector<1x8x128xf32>
    %32 = vector.shape_cast %31 : vector<1x8x128xf32> to vector<8x128xf32>
    %cst_29 = arith.constant dense<0.000000e+00> : vector<8x128xf32>
    %33 = tpu.matmul %27, %13, %cst_29 {dimension_numbers = #tpu.dot_dimension_numbers<[1], [0], [0], [1], [0, 0, 1, 1], [], []>} : vector<8x128xf32>, vector<128x128xf32>, vector<8x128xf32> -> vector<8x128xf32>
    %34 = arith.addf %32, %33 : vector<8x128xf32>
    %35 = math.tanh %34 : vector<8x128xf32>
    %c2_30 = arith.constant 2 : index
    %c0_31 = arith.constant 0 : index
    %c0_32 = arith.constant 0 : index
    %36 = vector.load %arg6[%c2_30, %c0_31, %c0_32] : memref<8x8x128xf32, #tpu.memory_space<vmem>>, vector<1x8x128xf32>
    %37 = vector.shape_cast %36 : vector<1x8x128xf32> to vector<8x128xf32>
    %38 = vector.shape_cast %35 : vector<8x128xf32> to vector<1x8x128xf32>
    tpu.vector_store %arg6[%c2_30, %c0_31, %c0_32], %38 {strides = array<i32>} : memref<8x8x128xf32, #tpu.memory_space<vmem>>, vector<1x8x128xf32>,
    %c3 = arith.constant 3 : index
    %c0_33 = arith.constant 0 : index
    %c0_34 = arith.constant 0 : index
    %39 = vector.load %arg6[%c3, %c0_33, %c0_34] : memref<8x8x128xf32, #tpu.memory_space<vmem>>, vector<1x8x128xf32>
    %40 = vector.shape_cast %39 : vector<1x8x128xf32> to vector<8x128xf32>
    %cst_35 = arith.constant dense<0.000000e+00> : vector<8x128xf32>
    %41 = tpu.matmul %35, %13, %cst_35 {dimension_numbers = #tpu.dot_dimension_numbers<[1], [0], [0], [1], [0, 0, 1, 1], [], []>} : vector<8x128xf32>, vector<128x128xf32>, vector<8x128xf32> -> vector<8x128xf32>
    %42 = arith.addf %40, %41 : vector<8x128xf32>
    %43 = math.tanh %42 : vector<8x128xf32>
    %c3_36 = arith.constant 3 : index
    %c0_37 = arith.constant 0 : index
    %c0_38 = arith.constant 0 : index
    %44 = vector.load %arg6[%c3_36, %c0_37, %c0_38] : memref<8x8x128xf32, #tpu.memory_space<vmem>>, vector<1x8x128xf32>
    %45 = vector.shape_cast %44 : vector<1x8x128xf32> to vector<8x128xf32>
    %46 = vector.shape_cast %43 : vector<8x128xf32> to vector<1x8x128xf32>
    tpu.vector_store %arg6[%c3_36, %c0_37, %c0_38], %46 {strides = array<i32>} : memref<8x8x128xf32, #tpu.memory_space<vmem>>, vector<1x8x128xf32>,
    %c4 = arith.constant 4 : index
    %c0_39 = arith.constant 0 : index
    %c0_40 = arith.constant 0 : index
    %47 = vector.load %arg6[%c4, %c0_39, %c0_40] : memref<8x8x128xf32, #tpu.memory_space<vmem>>, vector<1x8x128xf32>
    %48 = vector.shape_cast %47 : vector<1x8x128xf32> to vector<8x128xf32>
    %cst_41 = arith.constant dense<0.000000e+00> : vector<8x128xf32>
    %49 = tpu.matmul %43, %13, %cst_41 {dimension_numbers = #tpu.dot_dimension_numbers<[1], [0], [0], [1], [0, 0, 1, 1], [], []>} : vector<8x128xf32>, vector<128x128xf32>, vector<8x128xf32> -> vector<8x128xf32>
    %50 = arith.addf %48, %49 : vector<8x128xf32>
    %51 = math.tanh %50 : vector<8x128xf32>
    %c4_42 = arith.constant 4 : index
    %c0_43 = arith.constant 0 : index
    %c0_44 = arith.constant 0 : index
    %52 = vector.load %arg6[%c4_42, %c0_43, %c0_44] : memref<8x8x128xf32, #tpu.memory_space<vmem>>, vector<1x8x128xf32>
    %53 = vector.shape_cast %52 : vector<1x8x128xf32> to vector<8x128xf32>
    %54 = vector.shape_cast %51 : vector<8x128xf32> to vector<1x8x128xf32>
    tpu.vector_store %arg6[%c4_42, %c0_43, %c0_44], %54 {strides = array<i32>} : memref<8x8x128xf32, #tpu.memory_space<vmem>>, vector<1x8x128xf32>,
    %c5 = arith.constant 5 : index
    %c0_45 = arith.constant 0 : index
    %c0_46 = arith.constant 0 : index
    %55 = vector.load %arg6[%c5, %c0_45, %c0_46] : memref<8x8x128xf32, #tpu.memory_space<vmem>>, vector<1x8x128xf32>
    %56 = vector.shape_cast %55 : vector<1x8x128xf32> to vector<8x128xf32>
    %cst_47 = arith.constant dense<0.000000e+00> : vector<8x128xf32>
    %57 = tpu.matmul %51, %13, %cst_47 {dimension_numbers = #tpu.dot_dimension_numbers<[1], [0], [0], [1], [0, 0, 1, 1], [], []>} : vector<8x128xf32>, vector<128x128xf32>, vector<8x128xf32> -> vector<8x128xf32>
    %58 = arith.addf %56, %57 : vector<8x128xf32>
    %59 = math.tanh %58 : vector<8x128xf32>
    %c5_48 = arith.constant 5 : index
    %c0_49 = arith.constant 0 : index
    %c0_50 = arith.constant 0 : index
    %60 = vector.load %arg6[%c5_48, %c0_49, %c0_50] : memref<8x8x128xf32, #tpu.memory_space<vmem>>, vector<1x8x128xf32>
    %61 = vector.shape_cast %60 : vector<1x8x128xf32> to vector<8x128xf32>
    %62 = vector.shape_cast %59 : vector<8x128xf32> to vector<1x8x128xf32>
    tpu.vector_store %arg6[%c5_48, %c0_49, %c0_50], %62 {strides = array<i32>} : memref<8x8x128xf32, #tpu.memory_space<vmem>>, vector<1x8x128xf32>,
    %c6 = arith.constant 6 : index
    %c0_51 = arith.constant 0 : index
    %c0_52 = arith.constant 0 : index
    %63 = vector.load %arg6[%c6, %c0_51, %c0_52] : memref<8x8x128xf32, #tpu.memory_space<vmem>>, vector<1x8x128xf32>
    %64 = vector.shape_cast %63 : vector<1x8x128xf32> to vector<8x128xf32>
    %cst_53 = arith.constant dense<0.000000e+00> : vector<8x128xf32>
    %65 = tpu.matmul %59, %13, %cst_53 {dimension_numbers = #tpu.dot_dimension_numbers<[1], [0], [0], [1], [0, 0, 1, 1], [], []>} : vector<8x128xf32>, vector<128x128xf32>, vector<8x128xf32> -> vector<8x128xf32>
    %66 = arith.addf %64, %65 : vector<8x128xf32>
    %67 = math.tanh %66 : vector<8x128xf32>
    %c6_54 = arith.constant 6 : index
    %c0_55 = arith.constant 0 : index
    %c0_56 = arith.constant 0 : index
    %68 = vector.load %arg6[%c6_54, %c0_55, %c0_56] : memref<8x8x128xf32, #tpu.memory_space<vmem>>, vector<1x8x128xf32>
    %69 = vector.shape_cast %68 : vector<1x8x128xf32> to vector<8x128xf32>
    %70 = vector.shape_cast %67 : vector<8x128xf32> to vector<1x8x128xf32>
    tpu.vector_store %arg6[%c6_54, %c0_55, %c0_56], %70 {strides = array<i32>} : memref<8x8x128xf32, #tpu.memory_space<vmem>>, vector<1x8x128xf32>,
    %c7 = arith.constant 7 : index
    %c0_57 = arith.constant 0 : index
    %c0_58 = arith.constant 0 : index
    %71 = vector.load %arg6[%c7, %c0_57, %c0_58] : memref<8x8x128xf32, #tpu.memory_space<vmem>>, vector<1x8x128xf32>
    %72 = vector.shape_cast %71 : vector<1x8x128xf32> to vector<8x128xf32>
    %cst_59 = arith.constant dense<0.000000e+00> : vector<8x128xf32>
    %73 = tpu.matmul %67, %13, %cst_59 {dimension_numbers = #tpu.dot_dimension_numbers<[1], [0], [0], [1], [0, 0, 1, 1], [], []>} : vector<8x128xf32>, vector<128x128xf32>, vector<8x128xf32> -> vector<8x128xf32>
    %74 = arith.addf %72, %73 : vector<8x128xf32>
    %75 = math.tanh %74 : vector<8x128xf32>
    %c7_60 = arith.constant 7 : index
    %c0_61 = arith.constant 0 : index
    %c0_62 = arith.constant 0 : index
    %76 = vector.load %arg6[%c7_60, %c0_61, %c0_62] : memref<8x8x128xf32, #tpu.memory_space<vmem>>, vector<1x8x128xf32>
    %77 = vector.shape_cast %76 : vector<1x8x128xf32> to vector<8x128xf32>
    %78 = vector.shape_cast %75 : vector<8x128xf32> to vector<1x8x128xf32>
    tpu.vector_store %arg6[%c7_60, %c0_61, %c0_62], %78 {strides = array<i32>} : memref<8x8x128xf32, #tpu.memory_space<vmem>>, vector<1x8x128xf32>,
    %c0_63 = arith.constant 0 : index
    %c0_64 = arith.constant 0 : index
    %79 = vector.load %arg7[%c0_63, %c0_64] : memref<8x128xf32, #tpu.memory_space<vmem>>, vector<8x128xf32>
    tpu.vector_store %arg7[%c0_63, %c0_64], %75 {strides = array<i32>} : memref<8x128xf32, #tpu.memory_space<vmem>>, vector<8x128xf32>,
    return
  }
  func.func @transform_0(%arg0: i32, %arg1: i32) -> (i32, i32, i32) {
    %c0_i32 = arith.constant 0 : i32
    %c0_i32_0 = arith.constant 0 : i32
    return %arg1, %arg0, %c0_i32 : i32, i32, i32
  }
  func.func @transform_1(%arg0: i32, %arg1: i32) -> (i32, i32) {
    %c0_i32 = arith.constant 0 : i32
    %c0_i32_0 = arith.constant 0 : i32
    %c0_i32_1 = arith.constant 0 : i32
    return %c0_i32, %c0_i32_0 : i32, i32
  }
  func.func @transform_2(%arg0: i32, %arg1: i32) -> (i32, i32) {
    %c0_i32 = arith.constant 0 : i32
    %c0_i32_0 = arith.constant 0 : i32
    %c0_i32_1 = arith.constant 0 : i32
    return %c0_i32, %c0_i32_0 : i32, i32
  }
  func.func @transform_3(%arg0: i32, %arg1: i32) -> (i32, i32) {
    %c0_i32 = arith.constant 0 : i32
    %c0_i32_0 = arith.constant 0 : i32
    %c0_i32_1 = arith.constant 0 : i32
    return %c0_i32, %c0_i32_0 : i32, i32
  }
  func.func @transform_4(%arg0: i32, %arg1: i32) -> (i32, i32, i32) {
    %c0_i32 = arith.constant 0 : i32
    %c0_i32_0 = arith.constant 0 : i32
    return %arg1, %arg0, %c0_i32 : i32, i32, i32
  }
  func.func @transform_5(%arg0: i32, %arg1: i32) -> (i32, i32) {
    %c0_i32 = arith.constant 0 : i32
    %c0_i32_0 = arith.constant 0 : i32
    return %arg0, %c0_i32 : i32, i32
  }
}

module attributes {stable_mosaic.version = 11 : i64} {
  func.func @kernel(%arg0: i32, %arg1: i32, %arg2: memref<8x8x128xf32, #tpu.memory_space<vmem>>, %arg3: memref<128x128xf32, #tpu.memory_space<vmem>>, %arg4: memref<128x128xf32, #tpu.memory_space<vmem>>, %arg5: memref<1x128xf32, #tpu.memory_space<vmem>>, %arg6: memref<8x8x128xf32, #tpu.memory_space<vmem>>, %arg7: memref<8x128xf32, #tpu.memory_space<vmem>>) attributes {dimension_semantics = [#tpu.dimension_semantics<parallel>, #tpu.dimension_semantics<arbitrary>], iteration_bounds = array<i64: 1, 1>, scalar_prefetch = 0 : i64, scratch_operands = 0 : i64, tpu.core_type = #tpu.core_type<tc>, window_params = [{transform_indices = @transform_0, window_bounds = array<i64: 8, 8, 128>}, {pipeline_mode = #tpu.pipeline_mode<synchronous>, transform_indices = @transform_1, window_bounds = array<i64: 128, 128>}, {pipeline_mode = #tpu.pipeline_mode<synchronous>, transform_indices = @transform_2, window_bounds = array<i64: 128, 128>}, {pipeline_mode = #tpu.pipeline_mode<synchronous>, transform_indices = @transform_3, window_bounds = array<i64: 1, 128>}, {transform_indices = @transform_4, window_bounds = array<i64: 8, 8, 128>}, {transform_indices = @transform_5, window_bounds = array<i64: 8, 128>}]} {
    %c0_i32 = arith.constant 0 : i32
    %0 = arith.cmpi eq, %arg1, %c0_i32 : i32
    %1 = arith.extui %0 : i1 to i32
    %c0_i32_0 = arith.constant 0 : i32
    %2 = arith.cmpi ne, %1, %c0_i32_0 : i32
    scf.if %2 {
      %cst_65 = arith.constant 0.000000e+00 : f32
      %80 = vector.broadcast %cst_65 : f32 to vector<8x128xf32>
      %c0_66 = arith.constant 0 : index
      %c0_67 = arith.constant 0 : index
      %81 = vector.load %arg7[%c0_66, %c0_67] : memref<8x128xf32, #tpu.memory_space<vmem>>, vector<8x128xf32>
      tpu.vector_store %arg7[%c0_66, %c0_67], %80 {strides = array<i32>} : memref<8x128xf32, #tpu.memory_space<vmem>>, vector<8x128xf32>,
    } else {
    }
    %c0 = arith.constant 0 : index
    %c0_1 = arith.constant 0 : index
    %c0_2 = arith.constant 0 : index
    %3 = vector.load %arg2[%c0, %c0_1, %c0_2] : memref<8x8x128xf32, #tpu.memory_space<vmem>>, vector<8x8x128xf32>
    %4 = vector.shape_cast %3 : vector<8x8x128xf32> to vector<64x128xf32>
    %c0_3 = arith.constant 0 : index
    %c0_4 = arith.constant 0 : index
    %5 = vector.load %arg3[%c0_3, %c0_4] : memref<128x128xf32, #tpu.memory_space<vmem>>, vector<128x128xf32>
    %cst = arith.constant dense<0.000000e+00> : vector<64x128xf32>
    %6 = tpu.matmul %4, %5, %cst {dimension_numbers = #tpu.dot_dimension_numbers<[1], [0], [0], [1], [0, 0, 1, 1], [], []>} : vector<64x128xf32>, vector<128x128xf32>, vector<64x128xf32> -> vector<64x128xf32>
    %7 = vector.shape_cast %6 : vector<64x128xf32> to vector<8x8x128xf32>
    %c0_5 = arith.constant 0 : index
    %c0_6 = arith.constant 0 : index
    %8 = vector.load %arg5[%c0_5, %c0_6] : memref<1x128xf32, #tpu.memory_space<vmem>>, vector<1x128xf32>
    %9 = vector.shape_cast %8 : vector<1x128xf32> to vector<1x1x128xf32>
    %10 = vector.broadcast %9 : vector<1x1x128xf32> to vector<8x8x128xf32>
    %11 = arith.addf %7, %10 : vector<8x8x128xf32>
    %c0_7 = arith.constant 0 : index
    %c0_8 = arith.constant 0 : index
    %c0_9 = arith.constant 0 : index
    %12 = vector.load %arg6[%c0_7, %c0_8, %c0_9] : memref<8x8x128xf32, #tpu.memory_space<vmem>>, vector<8x8x128xf32>
    tpu.vector_store %arg6[%c0_7, %c0_8, %c0_9], %11 {strides = array<i32>} : memref<8x8x128xf32, #tpu.memory_space<vmem>>, vector<8x8x128xf32>,
    %c0_10 = arith.constant 0 : index
    %c0_11 = arith.constant 0 : index
    %13 = vector.load %arg4[%c0_10, %c0_11] : memref<128x128xf32, #tpu.memory_space<vmem>>, vector<128x128xf32>
    %c0_12 = arith.constant 0 : index
    %c0_13 = arith.constant 0 : index
    %14 = vector.load %arg7[%c0_12, %c0_13] : memref<8x128xf32, #tpu.memory_space<vmem>>, vector<8x128xf32>
    %c0_14 = arith.constant 0 : index
    %c0_15 = arith.constant 0 : index
    %c0_16 = arith.constant 0 : index
    %15 = vector.load %arg6[%c0_14, %c0_15, %c0_16] : memref<8x8x128xf32, #tpu.memory_space<vmem>>, vector<1x8x128xf32>
    %16 = vector.shape_cast %15 : vector<1x8x128xf32> to vector<8x128xf32>
    %cst_17 = arith.constant dense<0.000000e+00> : vector<8x128xf32>
    %17 = tpu.matmul %14, %13, %cst_17 {dimension_numbers = #tpu.dot_dimension_numbers<[1], [0], [0], [1], [0, 0, 1, 1], [], []>} : vector<8x128xf32>, vector<128x128xf32>, vector<8x128xf32> -> vector<8x128xf32>
    %18 = arith.addf %16, %17 : vector<8x128xf32>
    %19 = math.tanh %18 : vector<8x128xf32>
    %c0_18 = arith.constant 0 : index
    %c0_19 = arith.constant 0 : index
    %c0_20 = arith.constant 0 : index
    %20 = vector.load %arg6[%c0_18, %c0_19, %c0_20] : memref<8x8x128xf32, #tpu.memory_space<vmem>>, vector<1x8x128xf32>
    %21 = vector.shape_cast %20 : vector<1x8x128xf32> to vector<8x128xf32>
    %22 = vector.shape_cast %19 : vector<8x128xf32> to vector<1x8x128xf32>
    tpu.vector_store %arg6[%c0_18, %c0_19, %c0_20], %22 {strides = array<i32>} : memref<8x8x128xf32, #tpu.memory_space<vmem>>, vector<1x8x128xf32>,
    %c1 = arith.constant 1 : index
    %c0_21 = arith.constant 0 : index
    %c0_22 = arith.constant 0 : index
    %23 = vector.load %arg6[%c1, %c0_21, %c0_22] : memref<8x8x128xf32, #tpu.memory_space<vmem>>, vector<1x8x128xf32>
    %24 = vector.shape_cast %23 : vector<1x8x128xf32> to vector<8x128xf32>
    %cst_23 = arith.constant dense<0.000000e+00> : vector<8x128xf32>
    %25 = tpu.matmul %19, %13, %cst_23 {dimension_numbers = #tpu.dot_dimension_numbers<[1], [0], [0], [1], [0, 0, 1, 1], [], []>} : vector<8x128xf32>, vector<128x128xf32>, vector<8x128xf32> -> vector<8x128xf32>
    %26 = arith.addf %24, %25 : vector<8x128xf32>
    %27 = math.tanh %26 : vector<8x128xf32>
    %c1_24 = arith.constant 1 : index
    %c0_25 = arith.constant 0 : index
    %c0_26 = arith.constant 0 : index
    %28 = vector.load %arg6[%c1_24, %c0_25, %c0_26] : memref<8x8x128xf32, #tpu.memory_space<vmem>>, vector<1x8x128xf32>
    %29 = vector.shape_cast %28 : vector<1x8x128xf32> to vector<8x128xf32>
    %30 = vector.shape_cast %27 : vector<8x128xf32> to vector<1x8x128xf32>
    tpu.vector_store %arg6[%c1_24, %c0_25, %c0_26], %30 {strides = array<i32>} : memref<8x8x128xf32, #tpu.memory_space<vmem>>, vector<1x8x128xf32>,
    %c2 = arith.constant 2 : index
    %c0_27 = arith.constant 0 : index
    %c0_28 = arith.constant 0 : index
    %31 = vector.load %arg6[%c2, %c0_27, %c0_28] : memref<8x8x128xf32, #tpu.memory_space<vmem>>, vector<1x8x128xf32>
    %32 = vector.shape_cast %31 : vector<1x8x128xf32> to vector<8x128xf32>
    %cst_29 = arith.constant dense<0.000000e+00> : vector<8x128xf32>
    %33 = tpu.matmul %27, %13, %cst_29 {dimension_numbers = #tpu.dot_dimension_numbers<[1], [0], [0], [1], [0, 0, 1, 1], [], []>} : vector<8x128xf32>, vector<128x128xf32>, vector<8x128xf32> -> vector<8x128xf32>
    %34 = arith.addf %32, %33 : vector<8x128xf32>
    %35 = math.tanh %34 : vector<8x128xf32>
    %c2_30 = arith.constant 2 : index
    %c0_31 = arith.constant 0 : index
    %c0_32 = arith.constant 0 : index
    %36 = vector.load %arg6[%c2_30, %c0_31, %c0_32] : memref<8x8x128xf32, #tpu.memory_space<vmem>>, vector<1x8x128xf32>
    %37 = vector.shape_cast %36 : vector<1x8x128xf32> to vector<8x128xf32>
    %38 = vector.shape_cast %35 : vector<8x128xf32> to vector<1x8x128xf32>
    tpu.vector_store %arg6[%c2_30, %c0_31, %c0_32], %38 {strides = array<i32>} : memref<8x8x128xf32, #tpu.memory_space<vmem>>, vector<1x8x128xf32>,
    %c3 = arith.constant 3 : index
    %c0_33 = arith.constant 0 : index
    %c0_34 = arith.constant 0 : index
    %39 = vector.load %arg6[%c3, %c0_33, %c0_34] : memref<8x8x128xf32, #tpu.memory_space<vmem>>, vector<1x8x128xf32>
    %40 = vector.shape_cast %39 : vector<1x8x128xf32> to vector<8x128xf32>
    %cst_35 = arith.constant dense<0.000000e+00> : vector<8x128xf32>
    %41 = tpu.matmul %35, %13, %cst_35 {dimension_numbers = #tpu.dot_dimension_numbers<[1], [0], [0], [1], [0, 0, 1, 1], [], []>} : vector<8x128xf32>, vector<128x128xf32>, vector<8x128xf32> -> vector<8x128xf32>
    %42 = arith.addf %40, %41 : vector<8x128xf32>
    %43 = math.tanh %42 : vector<8x128xf32>
    %c3_36 = arith.constant 3 : index
    %c0_37 = arith.constant 0 : index
    %c0_38 = arith.constant 0 : index
    %44 = vector.load %arg6[%c3_36, %c0_37, %c0_38] : memref<8x8x128xf32, #tpu.memory_space<vmem>>, vector<1x8x128xf32>
    %45 = vector.shape_cast %44 : vector<1x8x128xf32> to vector<8x128xf32>
    %46 = vector.shape_cast %43 : vector<8x128xf32> to vector<1x8x128xf32>
    tpu.vector_store %arg6[%c3_36, %c0_37, %c0_38], %46 {strides = array<i32>} : memref<8x8x128xf32, #tpu.memory_space<vmem>>, vector<1x8x128xf32>,
    %c4 = arith.constant 4 : index
    %c0_39 = arith.constant 0 : index
    %c0_40 = arith.constant 0 : index
    %47 = vector.load %arg6[%c4, %c0_39, %c0_40] : memref<8x8x128xf32, #tpu.memory_space<vmem>>, vector<1x8x128xf32>
    %48 = vector.shape_cast %47 : vector<1x8x128xf32> to vector<8x128xf32>
    %cst_41 = arith.constant dense<0.000000e+00> : vector<8x128xf32>
    %49 = tpu.matmul %43, %13, %cst_41 {dimension_numbers = #tpu.dot_dimension_numbers<[1], [0], [0], [1], [0, 0, 1, 1], [], []>} : vector<8x128xf32>, vector<128x128xf32>, vector<8x128xf32> -> vector<8x128xf32>
    %50 = arith.addf %48, %49 : vector<8x128xf32>
    %51 = math.tanh %50 : vector<8x128xf32>
    %c4_42 = arith.constant 4 : index
    %c0_43 = arith.constant 0 : index
    %c0_44 = arith.constant 0 : index
    %52 = vector.load %arg6[%c4_42, %c0_43, %c0_44] : memref<8x8x128xf32, #tpu.memory_space<vmem>>, vector<1x8x128xf32>
    %53 = vector.shape_cast %52 : vector<1x8x128xf32> to vector<8x128xf32>
    %54 = vector.shape_cast %51 : vector<8x128xf32> to vector<1x8x128xf32>
    tpu.vector_store %arg6[%c4_42, %c0_43, %c0_44], %54 {strides = array<i32>} : memref<8x8x128xf32, #tpu.memory_space<vmem>>, vector<1x8x128xf32>,
    %c5 = arith.constant 5 : index
    %c0_45 = arith.constant 0 : index
    %c0_46 = arith.constant 0 : index
    %55 = vector.load %arg6[%c5, %c0_45, %c0_46] : memref<8x8x128xf32, #tpu.memory_space<vmem>>, vector<1x8x128xf32>
    %56 = vector.shape_cast %55 : vector<1x8x128xf32> to vector<8x128xf32>
    %cst_47 = arith.constant dense<0.000000e+00> : vector<8x128xf32>
    %57 = tpu.matmul %51, %13, %cst_47 {dimension_numbers = #tpu.dot_dimension_numbers<[1], [0], [0], [1], [0, 0, 1, 1], [], []>} : vector<8x128xf32>, vector<128x128xf32>, vector<8x128xf32> -> vector<8x128xf32>
    %58 = arith.addf %56, %57 : vector<8x128xf32>
    %59 = math.tanh %58 : vector<8x128xf32>
    %c5_48 = arith.constant 5 : index
    %c0_49 = arith.constant 0 : index
    %c0_50 = arith.constant 0 : index
    %60 = vector.load %arg6[%c5_48, %c0_49, %c0_50] : memref<8x8x128xf32, #tpu.memory_space<vmem>>, vector<1x8x128xf32>
    %61 = vector.shape_cast %60 : vector<1x8x128xf32> to vector<8x128xf32>
    %62 = vector.shape_cast %59 : vector<8x128xf32> to vector<1x8x128xf32>
    tpu.vector_store %arg6[%c5_48, %c0_49, %c0_50], %62 {strides = array<i32>} : memref<8x8x128xf32, #tpu.memory_space<vmem>>, vector<1x8x128xf32>,
    %c6 = arith.constant 6 : index
    %c0_51 = arith.constant 0 : index
    %c0_52 = arith.constant 0 : index
    %63 = vector.load %arg6[%c6, %c0_51, %c0_52] : memref<8x8x128xf32, #tpu.memory_space<vmem>>, vector<1x8x128xf32>
    %64 = vector.shape_cast %63 : vector<1x8x128xf32> to vector<8x128xf32>
    %cst_53 = arith.constant dense<0.000000e+00> : vector<8x128xf32>
    %65 = tpu.matmul %59, %13, %cst_53 {dimension_numbers = #tpu.dot_dimension_numbers<[1], [0], [0], [1], [0, 0, 1, 1], [], []>} : vector<8x128xf32>, vector<128x128xf32>, vector<8x128xf32> -> vector<8x128xf32>
    %66 = arith.addf %64, %65 : vector<8x128xf32>
    %67 = math.tanh %66 : vector<8x128xf32>
    %c6_54 = arith.constant 6 : index
    %c0_55 = arith.constant 0 : index
    %c0_56 = arith.constant 0 : index
    %68 = vector.load %arg6[%c6_54, %c0_55, %c0_56] : memref<8x8x128xf32, #tpu.memory_space<vmem>>, vector<1x8x128xf32>
    %69 = vector.shape_cast %68 : vector<1x8x128xf32> to vector<8x128xf32>
    %70 = vector.shape_cast %67 : vector<8x128xf32> to vector<1x8x128xf32>
    tpu.vector_store %arg6[%c6_54, %c0_55, %c0_56], %70 {strides = array<i32>} : memref<8x8x128xf32, #tpu.memory_space<vmem>>, vector<1x8x128xf32>,
    %c7 = arith.constant 7 : index
    %c0_57 = arith.constant 0 : index
    %c0_58 = arith.constant 0 : index
    %71 = vector.load %arg6[%c7, %c0_57, %c0_58] : memref<8x8x128xf32, #tpu.memory_space<vmem>>, vector<1x8x128xf32>
    %72 = vector.shape_cast %71 : vector<1x8x128xf32> to vector<8x128xf32>
    %cst_59 = arith.constant dense<0.000000e+00> : vector<8x128xf32>
    %73 = tpu.matmul %67, %13, %cst_59 {dimension_numbers = #tpu.dot_dimension_numbers<[1], [0], [0], [1], [0, 0, 1, 1], [], []>} : vector<8x128xf32>, vector<128x128xf32>, vector<8x128xf32> -> vector<8x128xf32>
    %74 = arith.addf %72, %73 : vector<8x128xf32>
    %75 = math.tanh %74 : vector<8x128xf32>
    %c7_60 = arith.constant 7 : index
    %c0_61 = arith.constant 0 : index
    %c0_62 = arith.constant 0 : index
    %76 = vector.load %arg6[%c7_60, %c0_61, %c0_62] : memref<8x8x128xf32, #tpu.memory_space<vmem>>, vector<1x8x128xf32>
    %77 = vector.shape_cast %76 : vector<1x8x128xf32> to vector<8x128xf32>
    %78 = vector.shape_cast %75 : vector<8x128xf32> to vector<1x8x128xf32>
    tpu.vector_store %arg6[%c7_60, %c0_61, %c0_62], %78 {strides = array<i32>} : memref<8x8x128xf32, #tpu.memory_space<vmem>>, vector<1x8x128xf32>,
    %c0_63 = arith.constant 0 : index
    %c0_64 = arith.constant 0 : index
    %79 = vector.load %arg7[%c0_63, %c0_64] : memref<8x128xf32, #tpu.memory_space<vmem>>, vector<8x128xf32>
    tpu.vector_store %arg7[%c0_63, %c0_64], %75 {strides = array<i32>} : memref<8x128xf32, #tpu.memory_space<vmem>>, vector<8x128xf32>,
    return
  }
  func.func @transform_0(%arg0: i32, %arg1: i32) -> (i32, i32, i32) {
    %c0_i32 = arith.constant 0 : i32
    %c0_i32_0 = arith.constant 0 : i32
    return %arg1, %arg0, %c0_i32 : i32, i32, i32
  }
  func.func @transform_1(%arg0: i32, %arg1: i32) -> (i32, i32) {
    %c0_i32 = arith.constant 0 : i32
    %c0_i32_0 = arith.constant 0 : i32
    %c0_i32_1 = arith.constant 0 : i32
    return %c0_i32, %c0_i32_0 : i32, i32
  }
  func.func @transform_2(%arg0: i32, %arg1: i32) -> (i32, i32) {
    %c0_i32 = arith.constant 0 : i32
    %c0_i32_0 = arith.constant 0 : i32
    %c0_i32_1 = arith.constant 0 : i32
    return %c0_i32, %c0_i32_0 : i32, i32
  }
  func.func @transform_3(%arg0: i32, %arg1: i32) -> (i32, i32) {
    %c0_i32 = arith.constant 0 : i32
    %c0_i32_0 = arith.constant 0 : i32
    %c0_i32_1 = arith.constant 0 : i32
    return %c0_i32, %c0_i32_0 : i32, i32
  }
  func.func @transform_4(%arg0: i32, %arg1: i32) -> (i32, i32, i32) {
    %c0_i32 = arith.constant 0 : i32
    %c0_i32_0 = arith.constant 0 : i32
    return %arg1, %arg0, %c0_i32 : i32, i32, i32
  }
  func.func @transform_5(%arg0: i32, %arg1: i32) -> (i32, i32) {
    %c0_i32 = arith.constant 0 : i32
    %c0_i32_0 = arith.constant 0 : i32
    return %arg0, %c0_i32 : i32, i32
  }
}

</mosaic_0001>

<bundles_post_ra>
// kernel: tpu_custom_call.1
= control target key start
LH: loop header
LB: loop body
LE: loop exit
PB: predicated region body
PF: predicated region fallthrough
CT: control target
= control target key end

     0   :  { %11 = vsyncpa [#allocation3], 0  ;;  %s802_s0 = inlined_call_operand.hbm [shape: f32[8,8,128], index: 0, kind: input, shape index: {}]   ;;  %s803_s1 = inlined_call_operand.hbm [shape: f32[128,128], index: 1, kind: input, shape index: {}]   ;;  %s804_s2 = inlined_call_operand.hbm [shape: f32[128,128], index: 2, kind: input, shape index: {}]   ;;  %s805_s3 = inlined_call_operand.vmem [shape: f32[1,128], index: 3, kind: input, shape index: {}]   ;;  %s806_s4 = inlined_call_operand.hbm [shape: f32[8,8,128], index: 4, kind: output, shape index: {0}]   ;;  %s807_s5 = inlined_call_operand.hbm [shape: f32[8,128], index: 5, kind: output, shape index: {1}]  }
   0x1   :  { %12 = vsyncpa [#allocation6], 0 }
   0x2   :  { %13 = vsyncpa [#allocation4], 0 }
   0x3   :  { %14 = vsyncpa [#allocation10], 0  ;;  %s32_s20 = sshll.u32 %s803_s1, 4  ;;  %s564_s21 = smov [#allocation5]   ;;  %s33_s20 = int_to_ptr.hbm [resolvable:$true] %s32_s20 }
   0x4   :  { %s34_s22 = sshll.u32 %s564_s21, 4  ;;  %s19_s25 = sshll.u32 %s802_s0, 4  ;;  %s35_s22 = int_to_ptr.vmem [resolvable:$true] %s34_s22  ;;  %s20_s25 = int_to_ptr.hbm [resolvable:$true] %s19_s25 }
   0x5   :  { %s565_s26 = smov 128   ;;  %s566_s27 = smov 8  }
   0x6   :  { %40 = dma.hbm_to_vmem [thread:$0]  %s33_s20, 2048, %s35_s22, [#allocation6], %s565_s26, %s565_s26, %s566_s27  }
   0x7   :  { %s567_s28 = smov [#allocation2]   ;;  %s45_s1 = sshll.u32 %s804_s2, 4  ;;  %s46_s1 = int_to_ptr.hbm [resolvable:$true] %s45_s1 }
   0x8   :  { %s21_s29 = sshll.u32 %s567_s28, 4  ;;  %s568_s0 = smov [#allocation7]   ;;  %s22_s29 = int_to_ptr.vmem [resolvable:$true] %s21_s29 }
   0x9   :  { %27 = dma.hbm_to_vmem [thread:$0]  %s20_s25, 1024, %s22_s29, [#allocation3], %s565_s26, %s565_s26, %s566_s27  }
   0xa   :  { %s47_s7 = sshll.u32 %s568_s0, 4  ;;  %s48_s7 = int_to_ptr.vmem [resolvable:$true] %s47_s7 }
   0xb   :  { %53 = dma.hbm_to_vmem [thread:$0]  %s46_s1, 2048, %s48_s7, [#allocation6], %s565_s26, %s565_s26, %s566_s27  }
   0xc   :  { %556 = dma.done.wait [#allocation3], 1024  }
   0xd   :  { %557 = vsyncadd [#allocation3], 4294966272 }
   0xe   :  { %558 = dma.done.wait [#allocation6], 4096  }
   0xf   :  { %559 = vsyncadd [#allocation6], 4294963200  ;;  %v96_v0 = vld [vmem:[#allocation5 + $0x78] sm:$0xff]  ;;  %v95_v1 = vld [vmem:[#allocation5 + $0x70] sm:$0xff]  ;;  %v569_v33 = vmov 0.0   ;;  %s381_s12 = sshll.u32 %s806_s4, 4  ;;  %s382_s12 = int_to_ptr.hbm [resolvable:$true] %s381_s12 }
  0x10   :  { %97 = vmatpush.msra.mxu0 %v96_v0  ;;  %v94_v2 = vld [vmem:[#allocation5 + $0x68] sm:$0xff]  ;;  %v620_v3 = vld [vmem:[#allocation7 + $0x78] sm:$0xff]  ;;  %v622_v4 = vld [vmem:[#allocation7 + $0x70] sm:$0xff]  ;;  %s571_s13 = smov [#allocation9]   ;;  %s395_s17 = sshll.u32 %s807_s5, 4  ;;  %s396_s17 = int_to_ptr.hbm [resolvable:$true] %s395_s17 }
  0x11   :  { %176 = vmatpush.msra.mxu1 %v620_v3  ;;  %v93_v5 = vld [vmem:[#allocation5 + $0x60] sm:$0xff]  ;;  %v625_v6 = vld [vmem:[#allocation7 + $0x68] sm:$0xff]  ;;  %201 = vmatpush.msra.mxu2 %v620_v3  ;;  %v92_v7 = vld [vmem:[#allocation5 + $0x58] sm:$0xff]  ;;  %s393_s14 = sshll.u32 %s571_s13, 4  ;;  %s394_s14 = int_to_ptr.vmem [resolvable:$true] %s393_s14 }
  0x12   :  { %98 = vmatpush.msra.mxu0 %v95_v1  ;;  %226 = vmatpush.msra.mxu3 %v620_v3  ;;  %v630_v8 = vld [vmem:[#allocation7 + $0x60] sm:$0xff]  ;;  %v91_v9 = vld [vmem:[#allocation5 + $0x50] sm:$0xff]  ;;  %v635_v10 = vld [vmem:[#allocation7 + $0x58] sm:$0xff] }
  0x13   :  { %177 = vmatpush.msra.mxu1 %v622_v4  ;;  %202 = vmatpush.msra.mxu2 %v622_v4  ;;  %v90_v11 = vld [vmem:[#allocation5 + $0x48] sm:$0xff]  ;;  %v640_v12 = vld [vmem:[#allocation7 + $0x50] sm:$0xff]  ;;  %v89_v13 = vld [vmem:[#allocation5 + $0x40] sm:$0xff] }
  0x14   :  { %99 = vmatpush.msra.mxu0 %v94_v2  ;;  %227 = vmatpush.msra.mxu3 %v622_v4  ;;  %v645_v14 = vld [vmem:[#allocation7 + $0x48] sm:$0xff]  ;;  %v88_v15 = vld [vmem:[#allocation5 + $0x38] sm:$0xff]  ;;  %v650_v16 = vld [vmem:[#allocation7 + $0x40] sm:$0xff] }
  0x15   :  { %178 = vmatpush.msra.mxu1 %v625_v6  ;;  %203 = vmatpush.msra.mxu2 %v625_v6  ;;  %v87_v17 = vld [vmem:[#allocation5 + $0x30] sm:$0xff]  ;;  %v655_v18 = vld [vmem:[#allocation7 + $0x38] sm:$0xff]  ;;  %v86_v19 = vld [vmem:[#allocation5 + $0x28] sm:$0xff] }
  0x16   :  { %100 = vmatpush.msra.mxu0 %v93_v5  ;;  %228 = vmatpush.msra.mxu3 %v625_v6  ;;  %v660_v20 = vld [vmem:[#allocation7 + $0x30] sm:$0xff]  ;;  %v85_v21 = vld [vmem:[#allocation5 + $0x20] sm:$0xff]  ;;  %v665_v22 = vld [vmem:[#allocation7 + $0x28] sm:$0xff] }
  0x17   :  { %179 = vmatpush.msra.mxu1 %v630_v8  ;;  %204 = vmatpush.msra.mxu2 %v630_v8  ;;  %v84_v23 = vld [vmem:[#allocation5 + $0x18] sm:$0xff]  ;;  %v670_v24 = vld [vmem:[#allocation7 + $0x20] sm:$0xff]  ;;  %v83_v25 = vld [vmem:[#allocation5 + $0x10] sm:$0xff] }
  0x18   :  { %101 = vmatpush.msra.mxu0 %v92_v7  ;;  %229 = vmatpush.msra.mxu3 %v630_v8  ;;  %v675_v26 = vld [vmem:[#allocation7 + $0x18] sm:$0xff]  ;;  %v82_v27 = vld [vmem:[#allocation5 + $0x8] sm:$0xff]  ;;  %v680_v28 = vld [vmem:[#allocation7 + $0x10] sm:$0xff] }
  0x19   :  { %180 = vmatpush.msra.mxu1 %v635_v10  ;;  %205 = vmatpush.msra.mxu2 %v635_v10  ;;  %v81_v29 = vld [vmem:[#allocation5] sm:$0xff]  ;;  %v685_v30 = vld [vmem:[#allocation7 + $0x8] sm:$0xff]  ;;  %v75_v41 = vld [vmem:[#allocation2 + $0x10] sm:$0xff] }
  0x1a   :  { %102 = vmatpush.msra.mxu0 %v91_v9  ;;  %230 = vmatpush.msra.mxu3 %v635_v10  ;;  %v73_v31 = vld [vmem:[#allocation2] sm:$0xff]  ;;  %v74_v34 = vld [vmem:[#allocation2 + $0x8] sm:$0xff]  ;;  %v76_v47 = vld [vmem:[#allocation2 + $0x18] sm:$0xff] }
  0x1b   :  { %181 = vmatpush.msra.mxu1 %v640_v12  ;;  %206 = vmatpush.msra.mxu2 %v640_v12  ;;  %v690_v32 = vld [vmem:[#allocation7] sm:$0xff]  ;;  %v78_v59 = vld [vmem:[#allocation2 + $0x28] sm:$0xff]  ;;  %v79_v1 = vld [vmem:[#allocation2 + $0x30] sm:$0xff] }
  0x1c   :  { %103 = vmatpush.msra.mxu0 %v90_v11  ;;  %231 = vmatpush.msra.mxu3 %v640_v12  ;;  %v783_v35 = vld [vmem:[%s805_s3] ss:$0 sm:$0xff]  ;;  %v80_v2 = vld [vmem:[#allocation2 + $0x38] sm:$0xff]  ;;  %s570_s3 = smov [#allocation8]  }
  0x1d   :  { %182 = vmatpush.msra.mxu1 %v645_v14  ;;  %207 = vmatpush.msra.mxu2 %v645_v14  ;;  %v77_v53 = vld [vmem:[#allocation2 + $0x20] sm:$0xff]  ;;  %s379_s9 = sshll.u32 %s570_s3, 4  ;;  %s380_s9 = int_to_ptr.vmem [resolvable:$true] %s379_s9 }
  0x1e   :  { %104 = vmatpush.msra.mxu0 %v89_v13  ;;  %232 = vmatpush.msra.mxu3 %v645_v14 }
  0x1f   :  { %183 = vmatpush.msra.mxu1 %v650_v16  ;;  %208 = vmatpush.msra.mxu2 %v650_v16 }
  0x20   :  { %105 = vmatpush.msra.mxu0 %v88_v15  ;;  %233 = vmatpush.msra.mxu3 %v650_v16 }
  0x21   :  { %184 = vmatpush.msra.mxu1 %v655_v18  ;;  %209 = vmatpush.msra.mxu2 %v655_v18 }
  0x22   :  { %106 = vmatpush.msra.mxu0 %v87_v17  ;;  %234 = vmatpush.msra.mxu3 %v655_v18 }
  0x23   :  { %185 = vmatpush.msra.mxu1 %v660_v20  ;;  %210 = vmatpush.msra.mxu2 %v660_v20 }
  0x24   :  { %107 = vmatpush.msra.mxu0 %v86_v19  ;;  %235 = vmatpush.msra.mxu3 %v660_v20 }
  0x25   :  { %186 = vmatpush.msra.mxu1 %v665_v22  ;;  %211 = vmatpush.msra.mxu2 %v665_v22 }
  0x26   :  { %108 = vmatpush.msra.mxu0 %v85_v21  ;;  %236 = vmatpush.msra.mxu3 %v665_v22 }
  0x27   :  { %187 = vmatpush.msra.mxu1 %v670_v24  ;;  %212 = vmatpush.msra.mxu2 %v670_v24 }
  0x28   :  { %109 = vmatpush.msra.mxu0 %v84_v23  ;;  %237 = vmatpush.msra.mxu3 %v670_v24 }
  0x29   :  { %188 = vmatpush.msra.mxu1 %v675_v26  ;;  %213 = vmatpush.msra.mxu2 %v675_v26 }
  0x2a   :  { %110 = vmatpush.msra.mxu0 %v83_v25  ;;  %238 = vmatpush.msra.mxu3 %v675_v26 }
  0x2b   :  { %189 = vmatpush.msra.mxu1 %v680_v28  ;;  %214 = vmatpush.msra.mxu2 %v680_v28 }
  0x2c   :  { %111 = vmatpush.msra.mxu0 %v82_v27  ;;  %239 = vmatpush.msra.mxu3 %v680_v28 }
  0x2d   :  { %190 = vmatpush.msra.mxu1 %v685_v30  ;;  %215 = vmatpush.msra.mxu2 %v685_v30 }
  0x2e   :  { %112 = vmatpush.msra.mxu0 %v81_v29  ;;  %240 = vmatpush.msra.mxu3 %v685_v30 }
  0x2f   :  { %113 = vmatmul.f32.vlgmr.msra.gmra.mxu0 %v73_v31  ;;  %191 = vmatpush.msra.mxu1 %v690_v32 }
  0x30   :  { %192 = vmatmul.f32.vlgmr.msra.gmra.mxu1 %v569_v33  ;;  %216 = vmatpush.msra.mxu2 %v690_v32 }
  0x31   :  { %241 = vmatpush.msra.mxu3 %v690_v32  ;;  %251 = vmatpush.msrb.mxu1 %v620_v3 }
  0x32   :  { %276 = vmatpush.msrb.mxu2 %v620_v3  ;;  %326 = vmatpush.msrb.mxu0 %v620_v3 }
  0x33   :  { %301 = vmatpush.msrb.mxu3 %v620_v3  ;;  %252 = vmatpush.msrb.mxu1 %v622_v4 }
  0x34   :  { %277 = vmatpush.msrb.mxu2 %v622_v4  ;;  %327 = vmatpush.msrb.mxu0 %v622_v4 }
  0x35   :  { %302 = vmatpush.msrb.mxu3 %v622_v4  ;;  %253 = vmatpush.msrb.mxu1 %v625_v6 }
  0x36   :  { %278 = vmatpush.msrb.mxu2 %v625_v6  ;;  %328 = vmatpush.msrb.mxu0 %v625_v6 }
  0x37   :  { %303 = vmatpush.msrb.mxu3 %v625_v6  ;;  %254 = vmatpush.msrb.mxu1 %v630_v8 }
  0x38   :  { %279 = vmatpush.msrb.mxu2 %v630_v8  ;;  %329 = vmatpush.msrb.mxu0 %v630_v8 }
  0x39   :  { %304 = vmatpush.msrb.mxu3 %v630_v8  ;;  %255 = vmatpush.msrb.mxu1 %v635_v10 }
  0x3a   :  { %280 = vmatpush.msrb.mxu2 %v635_v10  ;;  %330 = vmatpush.msrb.mxu0 %v635_v10 }
  0x3b   :  { %305 = vmatpush.msrb.mxu3 %v635_v10  ;;  %256 = vmatpush.msrb.mxu1 %v640_v12 }
  0x3c   :  { %281 = vmatpush.msrb.mxu2 %v640_v12  ;;  %331 = vmatpush.msrb.mxu0 %v640_v12 }
  0x3d   :  { %306 = vmatpush.msrb.mxu3 %v640_v12  ;;  %257 = vmatpush.msrb.mxu1 %v645_v14 }
  0x3e   :  { %282 = vmatpush.msrb.mxu2 %v645_v14  ;;  %332 = vmatpush.msrb.mxu0 %v645_v14 }
  0x3f   :  { %307 = vmatpush.msrb.mxu3 %v645_v14  ;;  %258 = vmatpush.msrb.mxu1 %v650_v16 }
  0x40   :  { %283 = vmatpush.msrb.mxu2 %v650_v16  ;;  %333 = vmatpush.msrb.mxu0 %v650_v16 }
  0x41   :  { %308 = vmatpush.msrb.mxu3 %v650_v16  ;;  %259 = vmatpush.msrb.mxu1 %v655_v18 }
  0x42   :  { %284 = vmatpush.msrb.mxu2 %v655_v18  ;;  %334 = vmatpush.msrb.mxu0 %v655_v18 }
  0x43   :  { %309 = vmatpush.msrb.mxu3 %v655_v18  ;;  %260 = vmatpush.msrb.mxu1 %v660_v20 }
  0x44   :  { %285 = vmatpush.msrb.mxu2 %v660_v20  ;;  %335 = vmatpush.msrb.mxu0 %v660_v20 }
  0x45   :  { %310 = vmatpush.msrb.mxu3 %v660_v20  ;;  %261 = vmatpush.msrb.mxu1 %v665_v22 }
  0x46   :  { %286 = vmatpush.msrb.mxu2 %v665_v22  ;;  %336 = vmatpush.msrb.mxu0 %v665_v22 }
  0x47   :  { %311 = vmatpush.msrb.mxu3 %v665_v22  ;;  %262 = vmatpush.msrb.mxu1 %v670_v24 }
  0x48   :  { %287 = vmatpush.msrb.mxu2 %v670_v24  ;;  %337 = vmatpush.msrb.mxu0 %v670_v24 }
  0x49   :  { %312 = vmatpush.msrb.mxu3 %v670_v24  ;;  %263 = vmatpush.msrb.mxu1 %v675_v26 }
  0x4a   :  { %288 = vmatpush.msrb.mxu2 %v675_v26  ;;  %338 = vmatpush.msrb.mxu0 %v675_v26 }
  0x4b   :  { %313 = vmatpush.msrb.mxu3 %v675_v26  ;;  %264 = vmatpush.msrb.mxu1 %v680_v28 }
  0x4c   :  { %289 = vmatpush.msrb.mxu2 %v680_v28  ;;  %339 = vmatpush.msrb.mxu0 %v680_v28 }
  0x4d   :  { %314 = vmatpush.msrb.mxu3 %v680_v28  ;;  %265 = vmatpush.msrb.mxu1 %v685_v30 }
  0x4e   :  { %290 = vmatpush.msrb.mxu2 %v685_v30  ;;  %340 = vmatpush.msrb.mxu0 %v685_v30 }
  0x4f   :  { %315 = vmatpush.msrb.mxu3 %v685_v30  ;;  %266 = vmatpush.msrb.mxu1 %v690_v32 }
  0x50   :  { %291 = vmatpush.msrb.mxu2 %v690_v32  ;;  %341 = vmatpush.msrb.mxu0 %v690_v32 }
  0x51   :  { %316 = vmatpush.msrb.mxu3 %v690_v32  ;;  %351 = vmatpush.msra.mxu1 %v620_v3 }
  0x52   :  { %116 = vmatmul.f32.gmra.mxu0 %v74_v34 }
  0x53   :  { %352 = vmatpush.msra.mxu1 %v622_v4 }
  0x55   :  { %353 = vmatpush.msra.mxu1 %v625_v6 }
  0x57   :  { %354 = vmatpush.msra.mxu1 %v630_v8 }
  0x59   :  { %355 = vmatpush.msra.mxu1 %v635_v10 }
  0x5a   :  { %119 = vmatmul.f32.gmra.mxu0 %v75_v41 }
  0x5b   :  { %356 = vmatpush.msra.mxu1 %v640_v12 }
  0x5d   :  { %357 = vmatpush.msra.mxu1 %v645_v14 }
  0x5f   :  { %358 = vmatpush.msra.mxu1 %v650_v16 }
  0x61   :  { %359 = vmatpush.msra.mxu1 %v655_v18 }
  0x62   :  { %122 = vmatmul.f32.gmra.mxu0 %v76_v47 }
  0x63   :  { %360 = vmatpush.msra.mxu1 %v660_v20 }
  0x65   :  { %361 = vmatpush.msra.mxu1 %v665_v22 }
  0x67   :  { %362 = vmatpush.msra.mxu1 %v670_v24 }
  0x69   :  { %363 = vmatpush.msra.mxu1 %v675_v26 }
  0x6a   :  { %125 = vmatmul.f32.gmra.mxu0 %v77_v53 }
  0x6b   :  { %364 = vmatpush.msra.mxu1 %v680_v28 }
  0x6d   :  { %365 = vmatpush.msra.mxu1 %v685_v30 }
  0x6f   :  { %366 = vmatpush.msra.mxu1 %v690_v32 }
  0x72   :  { %128 = vmatmul.f32.gmra.mxu0 %v78_v59 }
  0x7a   :  { %131 = vmatmul.f32.gmra.mxu0 %v79_v1 }
  0x82   :  { %134 = vmatmul.f32.gmra.mxu0 %v80_v2 }
  0xac   :  { %v114_v36 = vpop.f32.mrf.mxu0 }
  0xad   :  { %v142_v37 = vadd.f32 %v783_v35, %v114_v36  ;;  %v193_v38 = vpop.f32.mrf.mxu1 }
  0xaf   :  { %v196_v39 = vadd.f32 %v193_v38, %v142_v37 }
  0xb1   :  { %420 = vtanh.f32 %v196_v39 }
  0xb7   :  { %v421_v40 = vpop.eup %420 }
  0xb8   :  { %198 = vst [vmem:[#allocation8] sm:$0xff] %v421_v40  ;;  %217 = vmatmul.f32.vlgmr.msra.gmra.mxu2 %v421_v40 }
  0xcf   :  { %v117_v42 = vpop.f32.mrf.mxu0 }
  0xd0   :  { %v143_v43 = vadd.f32 %v783_v35, %v117_v42 }
  0xd7   :  { %v120_v48 = vpop.f32.mrf.mxu0 }
  0xd8   :  { %v144_v49 = vadd.f32 %v783_v35, %v120_v48 }
  0xdf   :  { %v123_v54 = vpop.f32.mrf.mxu0 }
  0xe0   :  { %v145_v55 = vadd.f32 %v783_v35, %v123_v54 }
  0xe7   :  { %v126_v60 = vpop.f32.mrf.mxu0 }
  0xe8   :  { %v146_v61 = vadd.f32 %v783_v35, %v126_v60 }
  0xef   :  { %v129_v3 = vpop.f32.mrf.mxu0 }
  0xf0   :  { %v147_v4 = vadd.f32 %v783_v35, %v129_v3 }
  0xf7   :  { %v132_v8 = vpop.f32.mrf.mxu0 }
  0xf8   :  { %v148_v10 = vadd.f32 %v783_v35, %v132_v8 }
  0xff   :  { %v135_v9 = vpop.f32.mrf.mxu0 }
 0x100   :  { %v149_v14 = vadd.f32 %v783_v35, %v135_v9 }
 0x13b   :  { %v218_v44 = vpop.f32.mrf.mxu2 }
 0x13c   :  { %v221_v45 = vadd.f32 %v218_v44, %v143_v43 }
 0x13e   :  { %422 = vtanh.f32 %v221_v45 }
 0x144   :  { %v423_v46 = vpop.eup %422 }
 0x145   :  { %223 = vst [vmem:[#allocation8 + $0x8] sm:$0xff] %v423_v46  ;;  %242 = vmatmul.f32.vlgmr.msra.gmra.mxu3 %v423_v46 }
 0x1c8   :  { %v243_v50 = vpop.f32.mrf.mxu3 }
 0x1c9   :  { %v246_v51 = vadd.f32 %v243_v50, %v144_v49 }
 0x1cb   :  { %424 = vtanh.f32 %v246_v51 }
 0x1d1   :  { %v425_v52 = vpop.eup %424 }
 0x1d2   :  { %248 = vst [vmem:[#allocation8 + $0x10] sm:$0xff] %v425_v52  ;;  %267 = vmatmul.f32.vlgmr.msrb.gmra.mxu1 %v425_v52 }
 0x24f   :  { %v268_v56 = vpop.f32.mrf.mxu1 }
 0x250   :  { %v271_v57 = vadd.f32 %v268_v56, %v145_v55 }
 0x252   :  { %426 = vtanh.f32 %v271_v57 }
 0x258   :  { %v427_v58 = vpop.eup %426 }
 0x259   :  { %273 = vst [vmem:[#allocation8 + $0x18] sm:$0xff] %v427_v58  ;;  %292 = vmatmul.f32.vlgmr.msrb.gmra.mxu2 %v427_v58 }
 0x2dc   :  { %v293_v62 = vpop.f32.mrf.mxu2 }
 0x2dd   :  { %v296_v63 = vadd.f32 %v293_v62, %v146_v61 }
 0x2df   :  { %428 = vtanh.f32 %v296_v63 }
 0x2e5   :  { %v429_v0 = vpop.eup %428 }
 0x2e6   :  { %298 = vst [vmem:[#allocation8 + $0x20] sm:$0xff] %v429_v0  ;;  %317 = vmatmul.f32.vlgmr.msrb.gmra.mxu3 %v429_v0 }
 0x369   :  { %v318_v5 = vpop.f32.mrf.mxu3 }
 0x36a   :  { %v321_v6 = vadd.f32 %v318_v5, %v147_v4 }
 0x36c   :  { %430 = vtanh.f32 %v321_v6 }
 0x372   :  { %v431_v7 = vpop.eup %430 }
 0x373   :  { %323 = vst [vmem:[#allocation8 + $0x28] sm:$0xff] %v431_v7  ;;  %342 = vmatmul.f32.vlgmr.msrb.gmra.mxu0 %v431_v7 }
 0x3f0   :  { %v343_v11 = vpop.f32.mrf.mxu0 }
 0x3f1   :  { %v346_v12 = vadd.f32 %v343_v11, %v148_v10 }
 0x3f3   :  { %432 = vtanh.f32 %v346_v12 }
 0x3f9   :  { %v433_v13 = vpop.eup %432 }
 0x3fa   :  { %348 = vst [vmem:[#allocation8 + $0x30] sm:$0xff] %v433_v13  ;;  %367 = vmatmul.f32.vlgmr.msra.gmra.mxu1 %v433_v13 }
 0x477   :  { %v368_v15 = vpop.f32.mrf.mxu1 }
 0x478   :  { %v371_v16 = vadd.f32 %v368_v15, %v149_v14 }
 0x47a   :  { %434 = vtanh.f32 %v371_v16 }
 0x480   :  { %v435_v17 = vpop.eup %434 }
 0x481   :  { %373 = vst [vmem:[#allocation8 + $0x38] sm:$0xff] %v435_v17 }
 0x482   :  { %374 = vst [vmem:[#allocation9] sm:$0xff] %v435_v17  ;;  %387 = dma.vmem_to_hbm [thread:$0]  %s380_s9, 1024, %s382_s12, [#allocation4], %s565_s26, %s565_s26, %s566_s27  }
 0x483   :  { %398 = dma.vmem_to_hbm [thread:$0]  %s394_s14, 128, %s396_s17, [#allocation10]  }
 0x484   :  { %560 = dma.done.wait [#allocation4], 1024  }
 0x485   :  { %561 = vsyncadd [#allocation4], 4294966272 }
 0x486   :  { %562 = dma.done.wait [#allocation10], 128  }
 0x487   :  { %563 = vsyncadd [#allocation10], 4294967168 }
 0x488   :  { %407 = vsyncpa [#allocation3], 1 }
 0x489   :  { %408 = vsyncpa [#allocation6], 1 }
 0x48a   :  { %409 = vsyncpa [#allocation4], 1 }
 0x48b   :  { %410 = vsyncpa [#allocation10], 1 }

// kernel: tpu_custom_call.1
= control target key start
LH: loop header
LB: loop body
LE: loop exit
PB: predicated region body
PF: predicated region fallthrough
CT: control target
= control target key end

     0   :  { %11 = vsyncpa [#allocation3], 0  ;;  %s802_s0 = inlined_call_operand.hbm [shape: f32[8,8,128], index: 0, kind: input, shape index: {}]   ;;  %s803_s1 = inlined_call_operand.hbm [shape: f32[128,128], index: 1, kind: input, shape index: {}]   ;;  %s804_s2 = inlined_call_operand.hbm [shape: f32[128,128], index: 2, kind: input, shape index: {}]   ;;  %s805_s3 = inlined_call_operand.vmem [shape: f32[1,128], index: 3, kind: input, shape index: {}]   ;;  %s806_s4 = inlined_call_operand.hbm [shape: f32[8,8,128], index: 4, kind: output, shape index: {0}]   ;;  %s807_s5 = inlined_call_operand.hbm [shape: f32[8,128], index: 5, kind: output, shape index: {1}]  }
   0x1   :  { %12 = vsyncpa [#allocation6], 0 }
   0x2   :  { %13 = vsyncpa [#allocation4], 0 }
   0x3   :  { %14 = vsyncpa [#allocation10], 0  ;;  %s32_s20 = sshll.u32 %s803_s1, 4  ;;  %s564_s21 = smov [#allocation5]   ;;  %s33_s20 = int_to_ptr.hbm [resolvable:$true] %s32_s20 }
   0x4   :  { %s34_s22 = sshll.u32 %s564_s21, 4  ;;  %s19_s25 = sshll.u32 %s802_s0, 4  ;;  %s35_s22 = int_to_ptr.vmem [resolvable:$true] %s34_s22  ;;  %s20_s25 = int_to_ptr.hbm [resolvable:$true] %s19_s25 }
   0x5   :  { %s565_s26 = smov 128   ;;  %s566_s27 = smov 8  }
   0x6   :  { %40 = dma.hbm_to_vmem [thread:$0]  %s33_s20, 2048, %s35_s22, [#allocation6], %s565_s26, %s565_s26, %s566_s27  }
   0x7   :  { %s567_s28 = smov [#allocation2]   ;;  %s45_s1 = sshll.u32 %s804_s2, 4  ;;  %s46_s1 = int_to_ptr.hbm [resolvable:$true] %s45_s1 }
   0x8   :  { %s21_s29 = sshll.u32 %s567_s28, 4  ;;  %s568_s0 = smov [#allocation7]   ;;  %s22_s29 = int_to_ptr.vmem [resolvable:$true] %s21_s29 }
   0x9   :  { %27 = dma.hbm_to_vmem [thread:$0]  %s20_s25, 1024, %s22_s29, [#allocation3], %s565_s26, %s565_s26, %s566_s27  }
   0xa   :  { %s47_s7 = sshll.u32 %s568_s0, 4  ;;  %s48_s7 = int_to_ptr.vmem [resolvable:$true] %s47_s7 }
   0xb   :  { %53 = dma.hbm_to_vmem [thread:$0]  %s46_s1, 2048, %s48_s7, [#allocation6], %s565_s26, %s565_s26, %s566_s27  }
   0xc   :  { %556 = dma.done.wait [#allocation3], 1024  }
   0xd   :  { %557 = vsyncadd [#allocation3], 4294966272 }
   0xe   :  { %558 = dma.done.wait [#allocation6], 4096  }
   0xf   :  { %559 = vsyncadd [#allocation6], 4294963200  ;;  %v96_v0 = vld [vmem:[#allocation5 + $0x78] sm:$0xff]  ;;  %v95_v1 = vld [vmem:[#allocation5 + $0x70] sm:$0xff]  ;;  %v569_v33 = vmov 0.0   ;;  %s381_s12 = sshll.u32 %s806_s4, 4  ;;  %s382_s12 = int_to_ptr.hbm [resolvable:$true] %s381_s12 }
  0x10   :  { %97 = vmatpush.msra.mxu0 %v96_v0  ;;  %v94_v2 = vld [vmem:[#allocation5 + $0x68] sm:$0xff]  ;;  %v620_v3 = vld [vmem:[#allocation7 + $0x78] sm:$0xff]  ;;  %v622_v4 = vld [vmem:[#allocation7 + $0x70] sm:$0xff]  ;;  %s571_s13 = smov [#allocation9]   ;;  %s395_s17 = sshll.u32 %s807_s5, 4  ;;  %s396_s17 = int_to_ptr.hbm [resolvable:$true] %s395_s17 }
  0x11   :  { %176 = vmatpush.msra.mxu1 %v620_v3  ;;  %v93_v5 = vld [vmem:[#allocation5 + $0x60] sm:$0xff]  ;;  %v625_v6 = vld [vmem:[#allocation7 + $0x68] sm:$0xff]  ;;  %201 = vmatpush.msra.mxu2 %v620_v3  ;;  %v92_v7 = vld [vmem:[#allocation5 + $0x58] sm:$0xff]  ;;  %s393_s14 = sshll.u32 %s571_s13, 4  ;;  %s394_s14 = int_to_ptr.vmem [resolvable:$true] %s393_s14 }
  0x12   :  { %98 = vmatpush.msra.mxu0 %v95_v1  ;;  %226 = vmatpush.msra.mxu3 %v620_v3  ;;  %v630_v8 = vld [vmem:[#allocation7 + $0x60] sm:$0xff]  ;;  %v91_v9 = vld [vmem:[#allocation5 + $0x50] sm:$0xff]  ;;  %v635_v10 = vld [vmem:[#allocation7 + $0x58] sm:$0xff] }
  0x13   :  { %177 = vmatpush.msra.mxu1 %v622_v4  ;;  %202 = vmatpush.msra.mxu2 %v622_v4  ;;  %v90_v11 = vld [vmem:[#allocation5 + $0x48] sm:$0xff]  ;;  %v640_v12 = vld [vmem:[#allocation7 + $0x50] sm:$0xff]  ;;  %v89_v13 = vld [vmem:[#allocation5 + $0x40] sm:$0xff] }
  0x14   :  { %99 = vmatpush.msra.mxu0 %v94_v2  ;;  %227 = vmatpush.msra.mxu3 %v622_v4  ;;  %v645_v14 = vld [vmem:[#allocation7 + $0x48] sm:$0xff]  ;;  %v88_v15 = vld [vmem:[#allocation5 + $0x38] sm:$0xff]  ;;  %v650_v16 = vld [vmem:[#allocation7 + $0x40] sm:$0xff] }
  0x15   :  { %178 = vmatpush.msra.mxu1 %v625_v6  ;;  %203 = vmatpush.msra.mxu2 %v625_v6  ;;  %v87_v17 = vld [vmem:[#allocation5 + $0x30] sm:$0xff]  ;;  %v655_v18 = vld [vmem:[#allocation7 + $0x38] sm:$0xff]  ;;  %v86_v19 = vld [vmem:[#allocation5 + $0x28] sm:$0xff] }
  0x16   :  { %100 = vmatpush.msra.mxu0 %v93_v5  ;;  %228 = vmatpush.msra.mxu3 %v625_v6  ;;  %v660_v20 = vld [vmem:[#allocation7 + $0x30] sm:$0xff]  ;;  %v85_v21 = vld [vmem:[#allocation5 + $0x20] sm:$0xff]  ;;  %v665_v22 = vld [vmem:[#allocation7 + $0x28] sm:$0xff] }
  0x17   :  { %179 = vmatpush.msra.mxu1 %v630_v8  ;;  %204 = vmatpush.msra.mxu2 %v630_v8  ;;  %v84_v23 = vld [vmem:[#allocation5 + $0x18] sm:$0xff]  ;;  %v670_v24 = vld [vmem:[#allocation7 + $0x20] sm:$0xff]  ;;  %v83_v25 = vld [vmem:[#allocation5 + $0x10] sm:$0xff] }
  0x18   :  { %101 = vmatpush.msra.mxu0 %v92_v7  ;;  %229 = vmatpush.msra.mxu3 %v630_v8  ;;  %v675_v26 = vld [vmem:[#allocation7 + $0x18] sm:$0xff]  ;;  %v82_v27 = vld [vmem:[#allocation5 + $0x8] sm:$0xff]  ;;  %v680_v28 = vld [vmem:[#allocation7 + $0x10] sm:$0xff] }
  0x19   :  { %180 = vmatpush.msra.mxu1 %v635_v10  ;;  %205 = vmatpush.msra.mxu2 %v635_v10  ;;  %v81_v29 = vld [vmem:[#allocation5] sm:$0xff]  ;;  %v685_v30 = vld [vmem:[#allocation7 + $0x8] sm:$0xff]  ;;  %v75_v41 = vld [vmem:[#allocation2 + $0x10] sm:$0xff] }
  0x1a   :  { %102 = vmatpush.msra.mxu0 %v91_v9  ;;  %230 = vmatpush.msra.mxu3 %v635_v10  ;;  %v73_v31 = vld [vmem:[#allocation2] sm:$0xff]  ;;  %v74_v34 = vld [vmem:[#allocation2 + $0x8] sm:$0xff]  ;;  %v76_v47 = vld [vmem:[#allocation2 + $0x18] sm:$0xff] }
  0x1b   :  { %181 = vmatpush.msra.mxu1 %v640_v12  ;;  %206 = vmatpush.msra.mxu2 %v640_v12  ;;  %v690_v32 = vld [vmem:[#allocation7] sm:$0xff]  ;;  %v78_v59 = vld [vmem:[#allocation2 + $0x28] sm:$0xff]  ;;  %v79_v1 = vld [vmem:[#allocation2 + $0x30] sm:$0xff] }
  0x1c   :  { %103 = vmatpush.msra.mxu0 %v90_v11  ;;  %231 = vmatpush.msra.mxu3 %v640_v12  ;;  %v783_v35 = vld [vmem:[%s805_s3] ss:$0 sm:$0xff]  ;;  %v80_v2 = vld [vmem:[#allocation2 + $0x38] sm:$0xff]  ;;  %s570_s3 = smov [#allocation8]  }
  0x1d   :  { %182 = vmatpush.msra.mxu1 %v645_v14  ;;  %207 = vmatpush.msra.mxu2 %v645_v14  ;;  %v77_v53 = vld [vmem:[#allocation2 + $0x20] sm:$0xff]  ;;  %s379_s9 = sshll.u32 %s570_s3, 4  ;;  %s380_s9 = int_to_ptr.vmem [resolvable:$true] %s379_s9 }
  0x1e   :  { %104 = vmatpush.msra.mxu0 %v89_v13  ;;  %232 = vmatpush.msra.mxu3 %v645_v14 }
  0x1f   :  { %183 = vmatpush.msra.mxu1 %v650_v16  ;;  %208 = vmatpush.msra.mxu2 %v650_v16 }
  0x20   :  { %105 = vmatpush.msra.mxu0 %v88_v15  ;;  %233 = vmatpush.msra.mxu3 %v650_v16 }
  0x21   :  { %184 = vmatpush.msra.mxu1 %v655_v18  ;;  %209 = vmatpush.msra.mxu2 %v655_v18 }
  0x22   :  { %106 = vmatpush.msra.mxu0 %v87_v17  ;;  %234 = vmatpush.msra.mxu3 %v655_v18 }
  0x23   :  { %185 = vmatpush.msra.mxu1 %v660_v20  ;;  %210 = vmatpush.msra.mxu2 %v660_v20 }
  0x24   :  { %107 = vmatpush.msra.mxu0 %v86_v19  ;;  %235 = vmatpush.msra.mxu3 %v660_v20 }
  0x25   :  { %186 = vmatpush.msra.mxu1 %v665_v22  ;;  %211 = vmatpush.msra.mxu2 %v665_v22 }
  0x26   :  { %108 = vmatpush.msra.mxu0 %v85_v21  ;;  %236 = vmatpush.msra.mxu3 %v665_v22 }
  0x27   :  { %187 = vmatpush.msra.mxu1 %v670_v24  ;;  %212 = vmatpush.msra.mxu2 %v670_v24 }
  0x28   :  { %109 = vmatpush.msra.mxu0 %v84_v23  ;;  %237 = vmatpush.msra.mxu3 %v670_v24 }
  0x29   :  { %188 = vmatpush.msra.mxu1 %v675_v26  ;;  %213 = vmatpush.msra.mxu2 %v675_v26 }
  0x2a   :  { %110 = vmatpush.msra.mxu0 %v83_v25  ;;  %238 = vmatpush.msra.mxu3 %v675_v26 }
  0x2b   :  { %189 = vmatpush.msra.mxu1 %v680_v28  ;;  %214 = vmatpush.msra.mxu2 %v680_v28 }
  0x2c   :  { %111 = vmatpush.msra.mxu0 %v82_v27  ;;  %239 = vmatpush.msra.mxu3 %v680_v28 }
  0x2d   :  { %190 = vmatpush.msra.mxu1 %v685_v30  ;;  %215 = vmatpush.msra.mxu2 %v685_v30 }
  0x2e   :  { %112 = vmatpush.msra.mxu0 %v81_v29  ;;  %240 = vmatpush.msra.mxu3 %v685_v30 }
  0x2f   :  { %113 = vmatmul.f32.vlgmr.msra.gmra.mxu0 %v73_v31  ;;  %191 = vmatpush.msra.mxu1 %v690_v32 }
  0x30   :  { %192 = vmatmul.f32.vlgmr.msra.gmra.mxu1 %v569_v33  ;;  %216 = vmatpush.msra.mxu2 %v690_v32 }
  0x31   :  { %241 = vmatpush.msra.mxu3 %v690_v32  ;;  %251 = vmatpush.msrb.mxu1 %v620_v3 }
  0x32   :  { %276 = vmatpush.msrb.mxu2 %v620_v3  ;;  %326 = vmatpush.msrb.mxu0 %v620_v3 }
  0x33   :  { %301 = vmatpush.msrb.mxu3 %v620_v3  ;;  %252 = vmatpush.msrb.mxu1 %v622_v4 }
  0x34   :  { %277 = vmatpush.msrb.mxu2 %v622_v4  ;;  %327 = vmatpush.msrb.mxu0 %v622_v4 }
  0x35   :  { %302 = vmatpush.msrb.mxu3 %v622_v4  ;;  %253 = vmatpush.msrb.mxu1 %v625_v6 }
  0x36   :  { %278 = vmatpush.msrb.mxu2 %v625_v6  ;;  %328 = vmatpush.msrb.mxu0 %v625_v6 }
  0x37   :  { %303 = vmatpush.msrb.mxu3 %v625_v6  ;;  %254 = vmatpush.msrb.mxu1 %v630_v8 }
  0x38   :  { %279 = vmatpush.msrb.mxu2 %v630_v8  ;;  %329 = vmatpush.msrb.mxu0 %v630_v8 }
  0x39   :  { %304 = vmatpush.msrb.mxu3 %v630_v8  ;;  %255 = vmatpush.msrb.mxu1 %v635_v10 }
  0x3a   :  { %280 = vmatpush.msrb.mxu2 %v635_v10  ;;  %330 = vmatpush.msrb.mxu0 %v635_v10 }
  0x3b   :  { %305 = vmatpush.msrb.mxu3 %v635_v10  ;;  %256 = vmatpush.msrb.mxu1 %v640_v12 }
  0x3c   :  { %281 = vmatpush.msrb.mxu2 %v640_v12  ;;  %331 = vmatpush.msrb.mxu0 %v640_v12 }
  0x3d   :  { %306 = vmatpush.msrb.mxu3 %v640_v12  ;;  %257 = vmatpush.msrb.mxu1 %v645_v14 }
  0x3e   :  { %282 = vmatpush.msrb.mxu2 %v645_v14  ;;  %332 = vmatpush.msrb.mxu0 %v645_v14 }
  0x3f   :  { %307 = vmatpush.msrb.mxu3 %v645_v14  ;;  %258 = vmatpush.msrb.mxu1 %v650_v16 }
  0x40   :  { %283 = vmatpush.msrb.mxu2 %v650_v16  ;;  %333 = vmatpush.msrb.mxu0 %v650_v16 }
  0x41   :  { %308 = vmatpush.msrb.mxu3 %v650_v16  ;;  %259 = vmatpush.msrb.mxu1 %v655_v18 }
  0x42   :  { %284 = vmatpush.msrb.mxu2 %v655_v18  ;;  %334 = vmatpush.msrb.mxu0 %v655_v18 }
  0x43   :  { %309 = vmatpush.msrb.mxu3 %v655_v18  ;;  %260 = vmatpush.msrb.mxu1 %v660_v20 }
  0x44   :  { %285 = vmatpush.msrb.mxu2 %v660_v20  ;;  %335 = vmatpush.msrb.mxu0 %v660_v20 }
  0x45   :  { %310 = vmatpush.msrb.mxu3 %v660_v20  ;;  %261 = vmatpush.msrb.mxu1 %v665_v22 }
  0x46   :  { %286 = vmatpush.msrb.mxu2 %v665_v22  ;;  %336 = vmatpush.msrb.mxu0 %v665_v22 }
  0x47   :  { %311 = vmatpush.msrb.mxu3 %v665_v22  ;;  %262 = vmatpush.msrb.mxu1 %v670_v24 }
  0x48   :  { %287 = vmatpush.msrb.mxu2 %v670_v24  ;;  %337 = vmatpush.msrb.mxu0 %v670_v24 }
  0x49   :  { %312 = vmatpush.msrb.mxu3 %v670_v24  ;;  %263 = vmatpush.msrb.mxu1 %v675_v26 }
  0x4a   :  { %288 = vmatpush.msrb.mxu2 %v675_v26  ;;  %338 = vmatpush.msrb.mxu0 %v675_v26 }
  0x4b   :  { %313 = vmatpush.msrb.mxu3 %v675_v26  ;;  %264 = vmatpush.msrb.mxu1 %v680_v28 }
  0x4c   :  { %289 = vmatpush.msrb.mxu2 %v680_v28  ;;  %339 = vmatpush.msrb.mxu0 %v680_v28 }
  0x4d   :  { %314 = vmatpush.msrb.mxu3 %v680_v28  ;;  %265 = vmatpush.msrb.mxu1 %v685_v30 }
  0x4e   :  { %290 = vmatpush.msrb.mxu2 %v685_v30  ;;  %340 = vmatpush.msrb.mxu0 %v685_v30 }
  0x4f   :  { %315 = vmatpush.msrb.mxu3 %v685_v30  ;;  %266 = vmatpush.msrb.mxu1 %v690_v32 }
  0x50   :  { %291 = vmatpush.msrb.mxu2 %v690_v32  ;;  %341 = vmatpush.msrb.mxu0 %v690_v32 }
  0x51   :  { %316 = vmatpush.msrb.mxu3 %v690_v32  ;;  %351 = vmatpush.msra.mxu1 %v620_v3 }
  0x52   :  { %116 = vmatmul.f32.gmra.mxu0 %v74_v34 }
  0x53   :  { %352 = vmatpush.msra.mxu1 %v622_v4 }
  0x55   :  { %353 = vmatpush.msra.mxu1 %v625_v6 }
  0x57   :  { %354 = vmatpush.msra.mxu1 %v630_v8 }
  0x59   :  { %355 = vmatpush.msra.mxu1 %v635_v10 }
  0x5a   :  { %119 = vmatmul.f32.gmra.mxu0 %v75_v41 }
  0x5b   :  { %356 = vmatpush.msra.mxu1 %v640_v12 }
  0x5d   :  { %357 = vmatpush.msra.mxu1 %v645_v14 }
  0x5f   :  { %358 = vmatpush.msra.mxu1 %v650_v16 }
  0x61   :  { %359 = vmatpush.msra.mxu1 %v655_v18 }
  0x62   :  { %122 = vmatmul.f32.gmra.mxu0 %v76_v47 }
  0x63   :  { %360 = vmatpush.msra.mxu1 %v660_v20 }
  0x65   :  { %361 = vmatpush.msra.mxu1 %v665_v22 }
  0x67   :  { %362 = vmatpush.msra.mxu1 %v670_v24 }
  0x69   :  { %363 = vmatpush.msra.mxu1 %v675_v26 }
  0x6a   :  { %125 = vmatmul.f32.gmra.mxu0 %v77_v53 }
  0x6b   :  { %364 = vmatpush.msra.mxu1 %v680_v28 }
  0x6d   :  { %365 = vmatpush.msra.mxu1 %v685_v30 }
  0x6f   :  { %366 = vmatpush.msra.mxu1 %v690_v32 }
  0x72   :  { %128 = vmatmul.f32.gmra.mxu0 %v78_v59 }
  0x7a   :  { %131 = vmatmul.f32.gmra.mxu0 %v79_v1 }
  0x82   :  { %134 = vmatmul.f32.gmra.mxu0 %v80_v2 }
  0xac   :  { %v114_v36 = vpop.f32.mrf.mxu0 }
  0xad   :  { %v142_v37 = vadd.f32 %v783_v35, %v114_v36  ;;  %v193_v38 = vpop.f32.mrf.mxu1 }
  0xaf   :  { %v196_v39 = vadd.f32 %v193_v38, %v142_v37 }
  0xb1   :  { %420 = vtanh.f32 %v196_v39 }
  0xb7   :  { %v421_v40 = vpop.eup %420 }
  0xb8   :  { %198 = vst [vmem:[#allocation8] sm:$0xff] %v421_v40  ;;  %217 = vmatmul.f32.vlgmr.msra.gmra.mxu2 %v421_v40 }
  0xcf   :  { %v117_v42 = vpop.f32.mrf.mxu0 }
  0xd0   :  { %v143_v43 = vadd.f32 %v783_v35, %v117_v42 }
  0xd7   :  { %v120_v48 = vpop.f32.mrf.mxu0 }
  0xd8   :  { %v144_v49 = vadd.f32 %v783_v35, %v120_v48 }
  0xdf   :  { %v123_v54 = vpop.f32.mrf.mxu0 }
  0xe0   :  { %v145_v55 = vadd.f32 %v783_v35, %v123_v54 }
  0xe7   :  { %v126_v60 = vpop.f32.mrf.mxu0 }
  0xe8   :  { %v146_v61 = vadd.f32 %v783_v35, %v126_v60 }
  0xef   :  { %v129_v3 = vpop.f32.mrf.mxu0 }
  0xf0   :  { %v147_v4 = vadd.f32 %v783_v35, %v129_v3 }
  0xf7   :  { %v132_v8 = vpop.f32.mrf.mxu0 }
  0xf8   :  { %v148_v10 = vadd.f32 %v783_v35, %v132_v8 }
  0xff   :  { %v135_v9 = vpop.f32.mrf.mxu0 }
 0x100   :  { %v149_v14 = vadd.f32 %v783_v35, %v135_v9 }
 0x13b   :  { %v218_v44 = vpop.f32.mrf.mxu2 }
 0x13c   :  { %v221_v45 = vadd.f32 %v218_v44, %v143_v43 }
 0x13e   :  { %422 = vtanh.f32 %v221_v45 }
 0x144   :  { %v423_v46 = vpop.eup %422 }
 0x145   :  { %223 = vst [vmem:[#allocation8 + $0x8] sm:$0xff] %v423_v46  ;;  %242 = vmatmul.f32.vlgmr.msra.gmra.mxu3 %v423_v46 }
 0x1c8   :  { %v243_v50 = vpop.f32.mrf.mxu3 }
 0x1c9   :  { %v246_v51 = vadd.f32 %v243_v50, %v144_v49 }
 0x1cb   :  { %424 = vtanh.f32 %v246_v51 }
 0x1d1   :  { %v425_v52 = vpop.eup %424 }
 0x1d2   :  { %248 = vst [vmem:[#allocation8 + $0x10] sm:$0xff] %v425_v52  ;;  %267 = vmatmul.f32.vlgmr.msrb.gmra.mxu1 %v425_v52 }
 0x24f   :  { %v268_v56 = vpop.f32.mrf.mxu1 }
 0x250   :  { %v271_v57 = vadd.f32 %v268_v56, %v145_v55 }
 0x252   :  { %426 = vtanh.f32 %v271_v57 }
 0x258   :  { %v427_v58 = vpop.eup %426 }
 0x259   :  { %273 = vst [vmem:[#allocation8 + $0x18] sm:$0xff] %v427_v58  ;;  %292 = vmatmul.f32.vlgmr.msrb.gmra.mxu2 %v427_v58 }
 0x2dc   :  { %v293_v62 = vpop.f32.mrf.mxu2 }
 0x2dd   :  { %v296_v63 = vadd.f32 %v293_v62, %v146_v61 }
 0x2df   :  { %428 = vtanh.f32 %v296_v63 }
 0x2e5   :  { %v429_v0 = vpop.eup %428 }
 0x2e6   :  { %298 = vst [vmem:[#allocation8 + $0x20] sm:$0xff] %v429_v0  ;;  %317 = vmatmul.f32.vlgmr.msrb.gmra.mxu3 %v429_v0 }
 0x369   :  { %v318_v5 = vpop.f32.mrf.mxu3 }
 0x36a   :  { %v321_v6 = vadd.f32 %v318_v5, %v147_v4 }
 0x36c   :  { %430 = vtanh.f32 %v321_v6 }
 0x372   :  { %v431_v7 = vpop.eup %430 }
 0x373   :  { %323 = vst [vmem:[#allocation8 + $0x28] sm:$0xff] %v431_v7  ;;  %342 = vmatmul.f32.vlgmr.msrb.gmra.mxu0 %v431_v7 }
 0x3f0   :  { %v343_v11 = vpop.f32.mrf.mxu0 }
 0x3f1   :  { %v346_v12 = vadd.f32 %v343_v11, %v148_v10 }
 0x3f3   :  { %432 = vtanh.f32 %v346_v12 }
 0x3f9   :  { %v433_v13 = vpop.eup %432 }
 0x3fa   :  { %348 = vst [vmem:[#allocation8 + $0x30] sm:$0xff] %v433_v13  ;;  %367 = vmatmul.f32.vlgmr.msra.gmra.mxu1 %v433_v13 }
 0x477   :  { %v368_v15 = vpop.f32.mrf.mxu1 }
 0x478   :  { %v371_v16 = vadd.f32 %v368_v15, %v149_v14 }
 0x47a   :  { %434 = vtanh.f32 %v371_v16 }
 0x480   :  { %v435_v17 = vpop.eup %434 }
 0x481   :  { %373 = vst [vmem:[#allocation8 + $0x38] sm:$0xff] %v435_v17 }
 0x482   :  { %374 = vst [vmem:[#allocation9] sm:$0xff] %v435_v17  ;;  %387 = dma.vmem_to_hbm [thread:$0]  %s380_s9, 1024, %s382_s12, [#allocation4], %s565_s26, %s565_s26, %s566_s27  }
 0x483   :  { %398 = dma.vmem_to_hbm [thread:$0]  %s394_s14, 128, %s396_s17, [#allocation10]  }
 0x484   :  { %560 = dma.done.wait [#allocation4], 1024  }
 0x485   :  { %561 = vsyncadd [#allocation4], 4294966272 }
 0x486   :  { %562 = dma.done.wait [#allocation10], 128  }
 0x487   :  { %563 = vsyncadd [#allocation10], 4294967168 }
 0x488   :  { %407 = vsyncpa [#allocation3], 1 }
 0x489   :  { %408 = vsyncpa [#allocation6], 1 }
 0x48a   :  { %409 = vsyncpa [#allocation4], 1 }
 0x48b   :  { %410 = vsyncpa [#allocation10], 1 }

</bundles_post_ra>
